<compile_context>
chip_gen: v6e
topology: v6e:2x2x1
jax: 0.10.0
libtpu: 0.0.40
codegen_flags: <defaults>
</compile_context>

<pallas_src>
import jax
import jax.numpy as jnp
from jax.experimental import pallas as pl
from jax.experimental.pallas import tpu as pltpu


# -----------------------------------------------------------------------------
# Pallas kernel: one grid step = Bt batch samples.
# -----------------------------------------------------------------------------
def aff_kernel(x_ref,      # (Bt, HW, C)  bf16 input block
               wr_ref,     # (C, C)       bf16 residual conv (+BN folded)
               w1_ref,     # (C, 2Ci)     bf16 [w1l | w1g]   (+BN folded)
               w2_ref,     # (2Ci, C)     bf16 [w2l ; w2g]   (+BN folded)
               bias_ref,   # (8, C)       f32  row0=br, row1=[b1l|b1g|0], row2=b2l+b2g
               o_ref):     # (Bt, HW, C)  f32 output block
    bt, hw, c = x_ref.shape
    ci2 = w1_ref.shape[1]          # 2 * inter_channels
    ci = ci2 // 2

    xb = x_ref[...].reshape(bt * hw, c)            # bf16, (Bt*HW, C)
    xf = xb.astype(jnp.float32)

    br = bias_ref[0:1, :]                          # (1, C)
    b1 = bias_ref[1:2, 0:ci2]                      # (1, 2Ci) == [b1l | b1g]
    b2 = bias_ref[2:3, :]                          # (1, C)   == b2l + b2g

    # --- ResidualConnection: xa = x + relu(bn(conv(x)) + x) ------------------
    r = jnp.dot(xb, wr_ref[...], preferred_element_type=jnp.float32) + br
    xa = xf + jnp.maximum(r + xf, 0.0)             # f32, (Bt*HW, C)

    # --- fused first conv of local + global branches -------------------------
    m = jnp.dot(xa.astype(jnp.bfloat16), w1_ref[...],
                preferred_element_type=jnp.float32) + b1     # (Bt*HW, 2Ci)

    hl = jnp.maximum(m[:, :ci], 0.0)               # local branch, (Bt*HW, Ci)

    # global branch: pooling commutes with the 1x1 conv (exact), ReLU after the
    # per-sample mean.
    mg = m[:, ci:].reshape(bt, hw, ci)
    hg = jnp.maximum(jnp.mean(mg, axis=1, keepdims=True), 0.0)   # (Bt, 1, Ci)
    hg_b = jnp.broadcast_to(hg, (bt, hw, ci)).reshape(bt * hw, ci)

    # --- fused second conv: xl + xg ------------------------------------------
    h = jnp.concatenate([hl, hg_b], axis=-1).astype(jnp.bfloat16)   # (Bt*HW, 2Ci)
    s = jnp.dot(h, w2_ref[...], preferred_element_type=jnp.float32) + b2

    # --- fuse: xi = x*wei + xa*(1-wei) == xa + wei*(x - xa) -------------------
    wei = jax.nn.sigmoid(s)
    out = xa + wei * (xf - xa)
    o_ref[...] = out.reshape(bt, hw, c)


# -----------------------------------------------------------------------------
# Wrapper
# -----------------------------------------------------------------------------
def _pick_block_batch(n, hw, c):
    """Largest divisor Bt of N such that (a) >= 2 grid steps remain when N > 1
    (keeps both v7x TensorCores busy) and (b) double-buffered x/out blocks stay
    well under the conservative 16 MiB scoped-VMEM default."""
    budget = 8 * 1024 * 1024
    per_sample = hw * c * (2 + 4) * 2      # bf16 in + f32 out, double-buffered
    best = 1
    for bt in range(1, n + 1):
        if n % bt:
            continue
        if bt * per_sample > budget:
            continue
        if n > 1 and n // bt < 2:
            continue
        best = bt
    return best


def _pack_params(params):
    """Concatenate branch weights and pack the 5 bias vectors into one slab."""
    c = params["wr"].shape[0]
    ci = params["w1l"].shape[1]
    w1 = jnp.concatenate([params["w1l"], params["w1g"]], axis=1)   # (C, 2Ci)
    w2 = jnp.concatenate([params["w2l"], params["w2g"]], axis=0)   # (2Ci, C)
    bias = jnp.zeros((8, c), jnp.float32)
    bias = bias.at[0, :].set(params["br"].reshape(-1))
    bias = bias.at[1, : 2 * ci].set(
        jnp.concatenate([params["b1l"].reshape(-1), params["b1g"].reshape(-1)]))
    bias = bias.at[2, :].set((params["b2l"] + params["b2g"]).reshape(-1))
    return (params["wr"].astype(jnp.bfloat16),
            w1.astype(jnp.bfloat16),
            w2.astype(jnp.bfloat16),
            bias)


def aff_forward(x_nchw, params):
    """x_nchw: (N, C, H, W) float32.  Returns (N, C, H, W) float32."""
    n, c, h, w = x_nchw.shape
    hw = h * w
    wr, w1, w2, bias = _pack_params(params)
    ci2 = w1.shape[1]

    # NCHW -> (N, HW, C); matmul operands in bf16 (accumulation stays f32).
    x = jnp.transpose(x_nchw, (0, 2, 3, 1)).reshape(n, hw, c).astype(jnp.bfloat16)

    bt = _pick_block_batch(n, hw, c)
    assert n % bt == 0
    grid = (n // bt,)

    full2 = lambda shape: pl.BlockSpec(shape, lambda i: (0, 0))

    out = pl.pallas_call(
        aff_kernel,
        out_shape=jax.ShapeDtypeStruct((n, hw, c), jnp.float32),
        grid_spec=pltpu.PrefetchScalarGridSpec(
            num_scalar_prefetch=0,
            grid=grid,
            in_specs=[
                pl.BlockSpec((bt, hw, c), lambda i: (i, 0, 0)),
                full2((c, c)),
                full2((c, ci2)),
                full2((ci2, c)),
                full2((8, c)),
            ],
            out_specs=pl.BlockSpec((bt, hw, c), lambda i: (i, 0, 0)),
        ),
        compiler_params=pltpu.CompilerParams(
            dimension_semantics=("parallel",)),
    )(x, wr, w1, w2, bias)

    # (N, HW, C) -> NCHW
    return jnp.transpose(out.reshape(n, h, w, c), (0, 3, 1, 2))


# -----------------------------------------------------------------------------
# Deterministic parameter construction (synthetic; BN folded into convs)
# -----------------------------------------------------------------------------
def _fold_bn(w, b, gamma, beta, mean, var, eps=1e-5):
    # w: (C_in, C_out) (== PyTorch conv weight[:, :, 0, 0].T), b: (C_out,)
    scale = gamma / jnp.sqrt(var + eps)
    w_f = w * scale[None, :]
    b_f = (b - mean) * scale + beta
    return w_f.astype(jnp.float32), b_f.reshape(1, -1).astype(jnp.float32)


def make_params(key, channels=64, r=4):
    ci = channels // r
    kit = iter(list(jax.random.split(key, 32)))

    def conv(c_in, c_out):
        k_w, k_b = next(kit), next(kit)
        bound = 1.0 / jnp.sqrt(c_in)
        w = jax.random.uniform(k_w, (c_in, c_out), jnp.float32, -bound, bound)
        b = jax.random.uniform(k_b, (c_out,), jnp.float32, -bound, bound)
        return w, b

    def bn(c):
        k1, k2, k3, k4 = next(kit), next(kit), next(kit), next(kit)
        gamma = jax.random.uniform(k1, (c,), jnp.float32, 0.5, 1.5)
        beta = 0.1 * jax.random.normal(k2, (c,), jnp.float32)
        mean = 0.1 * jax.random.normal(k3, (c,), jnp.float32)
        var = jax.random.uniform(k4, (c,), jnp.float32, 0.5, 1.5)
        return gamma, beta, mean, var

    c = channels
    wr, br = _fold_bn(*conv(c, c), *bn(c))         # ResidualConnection conv+bn
    w1l, b1l = _fold_bn(*conv(c, ci), *bn(ci))     # local_att conv1+bn
    w2l, b2l = _fold_bn(*conv(ci, c), *bn(c))      # local_att conv2+bn
    w1g, b1g = _fold_bn(*conv(c, ci), *bn(ci))     # global_att conv1+bn
    w2g, b2g = _fold_bn(*conv(ci, c), *bn(c))      # global_att conv2+bn

    return dict(wr=wr, br=br, w1l=w1l, b1l=b1l, w2l=w2l, b2l=b2l,
                w1g=w1g, b1g=b1g, w2g=w2g, b2g=b2g)


# -----------------------------------------------------------------------------
# Pure-JAX reference following the module structure, with the same bf16
# matmul-operand casting (f32 accumulation) the kernel uses.
# -----------------------------------------------------------------------------
def aff_reference(x_nchw, p):
    n, c, h, w = x_nchw.shape
    x = jnp.transpose(x_nchw, (0, 2, 3, 1)).reshape(n, h * w, c)
    xb = x.astype(jnp.bfloat16)
    xf = xb.astype(jnp.float32)

    def mm(a, wmat):
        return jnp.dot(a.astype(jnp.bfloat16), wmat.astype(jnp.bfloat16),
                       preferred_element_type=jnp.float32)

    y = jnp.maximum(mm(xb, p["wr"]) + p["br"] + xf, 0.0)
    xa = xf + y
    hl = jnp.maximum(mm(xa, p["w1l"]) + p["b1l"], 0.0)
    xl = mm(hl, p["w2l"]) + p["b2l"]
    g = jnp.mean(xa, axis=1, keepdims=True)
    hg = jnp.maximum(mm(g, p["w1g"]) + p["b1g"], 0.0)
    xg = mm(hg, p["w2g"]) + p["b2g"]
    wei = jax.nn.sigmoid(xl + xg)
    xi = xf * wei + xa * (1.0 - wei)
    return jnp.transpose(xi.reshape(n, h, w, c), (0, 3, 1, 2))


if __name__ == "__main__":
    key = jax.random.PRNGKey(0)
    k_x1, k_x2, k_p = jax.random.split(key, 3)

    C, H, W = 64, 8, 8                 # channels=64, r=4 (module defaults)
    params = make_params(k_p, channels=C, r=4)

    # Run at two batch sizes: N=8 exercises Bt=4 (2 grid steps of 4 samples),
    # N=2 exercises the Bt=1 fallback.
    for k_x, N in ((k_x1, 8), (k_x2, 2)):
        x = jax.random.normal(k_x, (N, C, H, W), jnp.float32)
        out = jax.block_until_ready(aff_forward(x, params))
        ref = aff_reference(x, params)
        assert out.shape == (N, C, H, W)
        assert jnp.allclose(out, ref, atol=1e-2, rtol=1e-2), (
            "mismatch vs JAX reference, max abs diff = "
            f"{float(jnp.max(jnp.abs(out - ref)))}")

    print("KERNEL_OK")
</pallas_src>

<mosaic_0001>
module attributes {stable_mosaic.version = 11 : i64} {
  func.func @aff_kernel(%arg0: i32, %arg1: memref<4x64x64xbf16, #tpu.memory_space<vmem>>, %arg2: memref<64x64xbf16, #tpu.memory_space<vmem>>, %arg3: memref<64x32xbf16, #tpu.memory_space<vmem>>, %arg4: memref<32x64xbf16, #tpu.memory_space<vmem>>, %arg5: memref<8x64xf32, #tpu.memory_space<vmem>>, %arg6: memref<4x64x64xf32, #tpu.memory_space<vmem>>) attributes {dimension_semantics = [#tpu.dimension_semantics<parallel>], iteration_bounds = array<i64: 2>, scalar_prefetch = 0 : i64, scratch_operands = 0 : i64, tpu.core_type = #tpu.core_type<tc>, window_params = [{transform_indices = @transform_0, window_bounds = array<i64: 4, 64, 64>}, {pipeline_mode = #tpu.pipeline_mode<synchronous>, transform_indices = @transform_1, window_bounds = array<i64: 64, 64>}, {pipeline_mode = #tpu.pipeline_mode<synchronous>, transform_indices = @transform_2, window_bounds = array<i64: 64, 32>}, {pipeline_mode = #tpu.pipeline_mode<synchronous>, transform_indices = @transform_3, window_bounds = array<i64: 32, 64>}, {pipeline_mode = #tpu.pipeline_mode<synchronous>, transform_indices = @transform_4, window_bounds = array<i64: 8, 64>}, {transform_indices = @transform_5, window_bounds = array<i64: 4, 64, 64>}]} {
    %c0 = arith.constant 0 : index
    %c0_0 = arith.constant 0 : index
    %c0_1 = arith.constant 0 : index
    %0 = vector.load %arg1[%c0, %c0_0, %c0_1] : memref<4x64x64xbf16, #tpu.memory_space<vmem>>, vector<4x64x64xbf16>
    %1 = vector.shape_cast %0 : vector<4x64x64xbf16> to vector<256x64xbf16>
    %2 = arith.extf %1 : vector<256x64xbf16> to vector<256x64xf32>
    %c0_2 = arith.constant 0 : index
    %c0_3 = arith.constant 0 : index
    %3 = vector.load %arg5[%c0_2, %c0_3] : memref<8x64xf32, #tpu.memory_space<vmem>>, vector<1x64xf32>
    %c1 = arith.constant 1 : index
    %c0_4 = arith.constant 0 : index
    %4 = vector.load %arg5[%c1, %c0_4] : memref<8x64xf32, #tpu.memory_space<vmem>>, vector<1x32xf32>
    %c2 = arith.constant 2 : index
    %c0_5 = arith.constant 0 : index
    %5 = vector.load %arg5[%c2, %c0_5] : memref<8x64xf32, #tpu.memory_space<vmem>>, vector<1x64xf32>
    %c0_6 = arith.constant 0 : index
    %c0_7 = arith.constant 0 : index
    %6 = vector.load %arg2[%c0_6, %c0_7] : memref<64x64xbf16, #tpu.memory_space<vmem>>, vector<64x64xbf16>
    %cst = arith.constant dense<0.000000e+00> : vector<256x64xf32>
    %7 = tpu.matmul %1, %6, %cst {dimension_numbers = #tpu.dot_dimension_numbers<[1], [0], [0], [1], [0, 0, 1, 1], [], []>} : vector<256x64xbf16>, vector<64x64xbf16>, vector<256x64xf32> -> vector<256x64xf32>
    %8 = vector.broadcast %3 : vector<1x64xf32> to vector<256x64xf32>
    %9 = arith.addf %7, %8 : vector<256x64xf32>
    %10 = arith.addf %9, %2 : vector<256x64xf32>
    %cst_8 = arith.constant 0.000000e+00 : f32
    %11 = vector.broadcast %cst_8 : f32 to vector<256x64xf32>
    %12 = arith.maximumf %10, %11 : vector<256x64xf32>
    %13 = arith.addf %2, %12 : vector<256x64xf32>
    %14 = arith.truncf %13 : vector<256x64xf32> to vector<256x64xbf16>
    %c0_9 = arith.constant 0 : index
    %c0_10 = arith.constant 0 : index
    %15 = vector.load %arg3[%c0_9, %c0_10] : memref<64x32xbf16, #tpu.memory_space<vmem>>, vector<64x32xbf16>
    %cst_11 = arith.constant dense<0.000000e+00> : vector<256x32xf32>
    %16 = tpu.matmul %14, %15, %cst_11 {dimension_numbers = #tpu.dot_dimension_numbers<[1], [0], [0], [1], [0, 0, 1, 1], [], []>} : vector<256x64xbf16>, vector<64x32xbf16>, vector<256x32xf32> -> vector<256x32xf32>
    %17 = vector.broadcast %4 : vector<1x32xf32> to vector<256x32xf32>
    %18 = arith.addf %16, %17 : vector<256x32xf32>
    %19 = vector.extract_strided_slice %18 {offsets = [0, 0], sizes = [256, 16], strides = [1, 1]} : vector<256x32xf32> to vector<256x16xf32>
    %cst_12 = arith.constant 0.000000e+00 : f32
    %20 = vector.broadcast %cst_12 : f32 to vector<256x16xf32>
    %21 = arith.maximumf %19, %20 : vector<256x16xf32>
    %22 = vector.extract_strided_slice %18 {offsets = [0, 16], sizes = [256, 16], strides = [1, 1]} : vector<256x32xf32> to vector<256x16xf32>
    %23 = vector.shape_cast %22 : vector<256x16xf32> to vector<4x64x16xf32>
    %cst_13 = arith.constant dense<0.000000e+00> : vector<4x16xf32>
    %24 = vector.multi_reduction <add>, %23, %cst_13 [1] : vector<4x64x16xf32> to vector<4x16xf32>
    %25 = vector.shape_cast %24 : vector<4x16xf32> to vector<4x1x16xf32>
    %cst_14 = arith.constant 6.400000e+01 : f32
    %26 = vector.broadcast %cst_14 : f32 to vector<4x1x16xf32>
    %27 = arith.divf %25, %26 : vector<4x1x16xf32>
    %cst_15 = arith.constant 0.000000e+00 : f32
    %28 = vector.broadcast %cst_15 : f32 to vector<4x1x16xf32>
    %29 = arith.maximumf %27, %28 : vector<4x1x16xf32>
    %30 = vector.shape_cast %29 : vector<4x1x16xf32> to vector<4x1x16xf32>
    %31 = vector.broadcast %30 : vector<4x1x16xf32> to vector<4x64x16xf32>
    %32 = vector.shape_cast %31 : vector<4x64x16xf32> to vector<256x16xf32>
    %33 = tpu.concatenate %21, %32 in 1 : vector<256x16xf32>, vector<256x16xf32> -> vector<256x32xf32>
    %34 = arith.truncf %33 : vector<256x32xf32> to vector<256x32xbf16>
    %c0_16 = arith.constant 0 : index
    %c0_17 = arith.constant 0 : index
    %35 = vector.load %arg4[%c0_16, %c0_17] : memref<32x64xbf16, #tpu.memory_space<vmem>>, vector<32x64xbf16>
    %cst_18 = arith.constant dense<0.000000e+00> : vector<256x64xf32>
    %36 = tpu.matmul %34, %35, %cst_18 {dimension_numbers = #tpu.dot_dimension_numbers<[1], [0], [0], [1], [0, 0, 1, 1], [], []>} : vector<256x32xbf16>, vector<32x64xbf16>, vector<256x64xf32> -> vector<256x64xf32>
    %37 = vector.broadcast %5 : vector<1x64xf32> to vector<256x64xf32>
    %38 = arith.addf %36, %37 : vector<256x64xf32>
    %39 = arith.negf %38 : vector<256x64xf32>
    %40 = math.exp %39 : vector<256x64xf32>
    %cst_19 = arith.constant 1.000000e+00 : f32
    %41 = vector.broadcast %cst_19 : f32 to vector<256x64xf32>
    %42 = arith.addf %41, %40 : vector<256x64xf32>
    %43 = arith.divf %41, %42 : vector<256x64xf32>
    %44 = arith.subf %2, %13 : vector<256x64xf32>
    %45 = arith.mulf %43, %44 : vector<256x64xf32>
    %46 = arith.addf %13, %45 : vector<256x64xf32>
    %47 = vector.shape_cast %46 : vector<256x64xf32> to vector<4x64x64xf32>
    %c0_20 = arith.constant 0 : index
    %c0_21 = arith.constant 0 : index
    %c0_22 = arith.constant 0 : index
    %48 = vector.load %arg6[%c0_20, %c0_21, %c0_22] : memref<4x64x64xf32, #tpu.memory_space<vmem>>, vector<4x64x64xf32>
    tpu.vector_store %arg6[%c0_20, %c0_21, %c0_22], %47 {strides = array<i32>} : memref<4x64x64xf32, #tpu.memory_space<vmem>>, vector<4x64x64xf32>,
    return
  }
  func.func @transform_0(%arg0: i32) -> (i32, i32, i32) {
    %c0_i32 = arith.constant 0 : i32
    %c0_i32_0 = arith.constant 0 : i32
    %c0_i32_1 = arith.constant 0 : i32
    return %arg0, %c0_i32, %c0_i32_0 : i32, i32, i32
  }
  func.func @transform_1(%arg0: i32) -> (i32, i32) {
    %c0_i32 = arith.constant 0 : i32
    %c0_i32_0 = arith.constant 0 : i32
    %c0_i32_1 = arith.constant 0 : i32
    return %c0_i32, %c0_i32_0 : i32, i32
  }
  func.func @transform_2(%arg0: i32) -> (i32, i32) {
    %c0_i32 = arith.constant 0 : i32
    %c0_i32_0 = arith.constant 0 : i32
    %c0_i32_1 = arith.constant 0 : i32
    return %c0_i32, %c0_i32_0 : i32, i32
  }
  func.func @transform_3(%arg0: i32) -> (i32, i32) {
    %c0_i32 = arith.constant 0 : i32
    %c0_i32_0 = arith.constant 0 : i32
    %c0_i32_1 = arith.constant 0 : i32
    return %c0_i32, %c0_i32_0 : i32, i32
  }
  func.func @transform_4(%arg0: i32) -> (i32, i32) {
    %c0_i32 = arith.constant 0 : i32
    %c0_i32_0 = arith.constant 0 : i32
    %c0_i32_1 = arith.constant 0 : i32
    return %c0_i32, %c0_i32_0 : i32, i32
  }
  func.func @transform_5(%arg0: i32) -> (i32, i32, i32) {
    %c0_i32 = arith.constant 0 : i32
    %c0_i32_0 = arith.constant 0 : i32
    %c0_i32_1 = arith.constant 0 : i32
    return %arg0, %c0_i32, %c0_i32_0 : i32, i32, i32
  }
}

</mosaic_0001>

<bundles_post_ra>
// kernel: tpu_custom_call.1
= control target key start
LH: loop header
LB: loop body
LE: loop exit
PB: predicated region body
PF: predicated region fallthrough
CT: control target
= control target key end

     0   :  { %10 = vsyncpa [#allocation3], 0  ;;  %s3606_s0 = inlined_call_operand.hbm [shape: bf16[8,64,64], index: 0, kind: input, shape index: {}]   ;;  %s3607_s1 = inlined_call_operand.vmem [shape: bf16[64,64], index: 1, kind: input, shape index: {}]   ;;  %s3608_s2 = inlined_call_operand.vmem [shape: bf16[64,32], index: 2, kind: input, shape index: {}]   ;;  %s3609_s3 = inlined_call_operand.vmem [shape: bf16[32,64], index: 3, kind: input, shape index: {}]   ;;  %s3610_s4 = inlined_call_operand.hbm [shape: f32[8,64], index: 4, kind: input, shape index: {}]   ;;  %s3611_s5 = inlined_call_operand.hbm [shape: f32[8,64,64], index: 5, kind: output, shape index: {}]  }
   0x1   :  { %12 = vsyncpa [#allocation3 + $0x1], 0 }
   0x2   :  { %13 = vsyncpa [#allocation6], 0 }
   0x3   :  { %14 = vsyncpa [#allocation4], 0 }
   0x4   :  { %16 = vsyncpa [#allocation4 + $0x1], 0  ;;  %s2538_s18 = smov 0   ;;  %s2540_s19 = smov 0  }
   0x5   :  { %s2542_s20 = smov 0   ;;  %s2544_s21 = smov 0  }
   0x6 LB: > { %s2559_s22 = sadd.s32 4294967295, %s2499_s21   ;;  %s1833_s23 = sadd.s32 4294967294, %s2499_s21   ;;  %s2499_s21 = sphi %s2544_s21, %s3770_s21   ;;  %s2495_s20 = sphi %s2542_s20, %s3769_s20   ;;  %s2491_s19 = sphi %s2540_s19, %s3768_s19   ;;  %s2487_s18 = sphi %s2538_s18, %s3767_s18  }
   0x7   : > { %s2563_s24 = sadd.s32 1, %s2499_s21   ;;  %s29_s25 = sadd.s32 1, %s2495_s20 }
   0x8   : > { %s26_s26 = ssub.s32 %s2499_s21, %s2563_s24  ;;  %p36_p0 = scmp.ne.s32.totalorder %s2495_s20, %s2491_s19 }
   0x9   : > { %p27_p1 = scmp.eq.s32.totalorder %s26_s26, 0  ;;  %p37_p2 = scmp.eq.s32.totalorder %s2499_s21, 0 }
   0xa   : > { %p42_p3 = scmp.ne.s32.totalorder %s2491_s19, %s2487_s18  ;;  %p3612_p4 = scmp.eq.s32.totalorder %s2559_s22, 0 }
   0xb   : > { %s2575_s27 = scalar_select %p27_p1, %s2495_s20, %s29_s25  }
   0xc   : > { %p2577_p5 = por %p37_p2, %p36_p0  ;;  %p2583_p6 = por %p3612_p4, %p42_p3 }
   0xd   : > { %p150_p7 = scmp.eq.s32.totalorder %s2559_s22, 1  ;;  %p156_p8 = scmp.eq.s32.totalorder %s1833_s23, 1 }
   0xe   : > { %s3675_s29 = scalar_select %p2583_p6, 1, 0 }
   0xf   : > { %p1834_p9 = scmp.ge.s32.totalorder %s2499_s21, 1  ;;  %p163_p10 = scmp.lt.s32.totalorder %s2499_s21, 3 }
  0x10   : > { %p2590_p11 = por %p150_p7, %p36_p0  ;;  %p2594_p12 = por %p156_p8, %p42_p3 }
  0x11   : > { %p2598_p13 = pnand %p1834_p9, %p163_p10  ;;  %s2501_s8 = smov [#allocation5]  }
  0x12   : > { %s3676_s30 = scalar_select %p2590_p11, 1, 0 }
  0x13   : > { %s3677_s6 = scalar_select %p2594_p12, 1, 0 }
  0x14   : > { %s3678_s7 = scalar_select %p2598_p13, 1, 0 }
  0x15   : > { %p2154_p2 = pneg %p2598_p13  ;;  %s185_s9 = sshll.u32 %s2501_s8, 4  ;;  %s186_s9 = int_to_ptr.vmem [resolvable:$true] %s185_s9 }
  0x16   : > { %p2167_p4 = scmp.lt.s32.totalorder %s2499_s21, 2  ;;  %p3679_p0 = scmp.eq.s32.totalorder %s2559_s22, 0 }
  0x17   : > { %s196_s11 = sand.u32 1, %s2495_s20   ;;  %s2388_s14 = scalar_lea.vmem %s186_s9, 128 }
  0x18   : > { %p2608_p7 = pnand %p2154_p2, %p3679_p0  ;;  %p2615_p3 = pnand %p2167_p4, %p2577_p5 }
  0x19   : > { %s1837_s13 = sshll.u32 %s196_s11, 7  ;;  %p2389_p9 = scmp.ne.s32.totalorder %s186_s9, %s2388_s14 }
  0x1a   : > { %p2379_p8 = pneg %p2608_p7  ;;  %p2396_p12 = scmp.lt.s32.totalorder %s186_s9, %s186_s9 }
  0x1b   : > { %p2397_p11 = scmp.lt.s32.totalorder %s2388_s14, %s2388_s14 }
  0x1c   : > { %p2391_p10 = pnand %p2389_p9, %p2379_p8 }
  0x1d   : > { %p2398_p2 = por %p2397_p11, %p2396_p12 }
  0x1e   : > { %p2392_p1 = pneg %p2391_p10 }
  0x20   : > { %p2399_p0 = pnand %p2398_p2, %p2392_p1 }
  0x22   : > { %2402 = shalt.err (!%p2399_p0)
}
  0x23   : > { %2157 = dma.hbm_to_vmem [thread:$0]  (!%p2608_p7), %s3610_s4, 128, %s186_s9, [#allocation6]  }
  0x24   : > { %s1961_s17 = sshll.u32 %s2499_s21, 11  ;;  %s200_s23 = scalar_lea.vmem [#allocation2], %s1837_s13 }
  0x25   : > { %s208_s25 = sshll.u32 %s200_s23, 4  ;;  %s2630_s8 = scalar_lea.hbm %s3606_s0, %s1961_s17  ;;  %s2632_s25 = int_to_ptr.vmem [resolvable:$true] %s208_s25 }
  0x26   : > { %s2634_s10 = scalar_lea.sflag [#allocation3], %s196_s11  ;;  %s2403_s14 = scalar_lea.hbm %s2630_s8, 2048 }
  0x27   : > { %p2404_p4 = scmp.ne.s32.totalorder %s2630_s8, %s2403_s14  ;;  %p2405_p5 = pneg %p2615_p3 }
  0x28   : > { %s2408_s15 = scalar_lea.hbm %s3606_s0, 4096  ;;  %p2409_p1 = scmp.lt.s32.totalorder %s2630_s8, %s3606_s0 }
  0x29   : > { %p2406_p11 = pnand %p2405_p5, %p2404_p4  ;;  %p2410_p7 = scmp.lt.s32.totalorder %s2408_s15, %s2403_s14 }
  0x2b   : > { %p2407_p12 = pneg %p2406_p11  ;;  %p2411_p8 = por %p2410_p7, %p2409_p1 }
  0x2d   : > { %p2412_p9 = pnand %p2411_p8, %p2407_p12 }
  0x2f   : > { %2415 = shalt.err (!%p2412_p9)
}
  0x30   : > { %s2416_s11 = scalar_lea.vmem %s2632_s25, 2048  ;;  %s2502_s23 = smov [#allocation2]  }
  0x31   : > { %p2417_p10 = scmp.ne.s32.totalorder %s2632_s25, %s2416_s11  ;;  %s2421_s26 = sshll.u32 %s2502_s23, 4  ;;  %s2422_s26 = int_to_ptr.vmem [resolvable:$false] %s2421_s26 }
  0x32   : > { %s2423_s28 = scalar_lea.vmem %s2422_s26, 4096  ;;  %p2424_p4 = scmp.lt.s32.totalorder %s2632_s25, %s2422_s26 }
  0x33   : > { %p2419_p2 = pnand %p2417_p10, %p2405_p5  ;;  %p2425_p11 = scmp.lt.s32.totalorder %s2423_s28, %s2416_s11 }
  0x35   : > { %p2420_p0 = pneg %p2419_p2  ;;  %p2426_p6 = por %p2425_p11, %p2424_p4 }
  0x37   : > { %p2427_p13 = pnand %p2426_p6, %p2420_p0 }
  0x39   : > { %2430 = shalt.err (!%p2427_p13)
}
  0x3a   : > { %s2503_s14 = smov 64   ;;  %s2504_s9 = smov 4  }
  0x3b   : > { %2161 = dma.hbm_to_vmem [thread:$0]  (!%p2615_p3), %s2630_s8, 2048, %s2632_s25, %s2634_s10, %s2503_s14, %s2503_s14, %s2504_s9  }
  0x3c   : > { %p3682_p5 = scmp.ne.s32.totalorder %s3678_s7, 0 }
  0x3e   : > { %220 = sbr.rel (%p3682_p5) target bundleno = 845 (0x34d), region = 40 }
  0x43   : > { %s2658_s13 = sand.u32 1, %s2491_s19   ;;  %p3683_p6 = scmp.ne.s32.totalorder %s3675_s29, 0 }
  0x44   : > { %s1842_s15 = sshll.u32 %s2658_s13, 7  ;;  %s223_s16 = scalar_lea.sflag [#allocation3], %s2658_s13 }
  0x45   : > { %s2662_s17 = scalar_lea.vmem [#allocation2], %s1842_s15 }
  0x46   : > { %2474 = dma.done.wait (%p3683_p6), %s223_s16, 2048  }
  0x47   : > { %2476 = vsyncadd (%p3683_p6), %s223_s16, 4294965248  ;;  %p3684_p13 = scmp.eq.s32.totalorder %s2559_s22, 0 }
  0x49   : > { %2478 = dma.done.wait (%p3684_p13), [#allocation6], 128   ;;  %p3685_p3 = pmov %p3684_p13 }
  0x4a   : > { %v2207_v0 = vld [vmem:[%s3607_s1 + $0x18] sm:$0xff]   ;;  %v2208_v1 = vld [vmem:[%s3607_s1 + $0x10] sm:$0xff]   ;;  %v2209_v2 = vld [vmem:[%s3607_s1 + $0x8] sm:$0xff]   ;;  %vm443_vm0 = vcmask 523264   ;;  %vm1042_vm1 = vcmask 261248   ;;  %vm1136_vm2 = vcmask 130048  }
  0x4b   : > { %2480 = vsyncadd (%p3685_p3), [#allocation6], 4294967168  ;;  %2022 = vmatprep.subr.bf16.mxu0 %v2207_v0  ;;  %2138 = vmatprep.subr.bf16.mxu1 %v2207_v0  ;;  %v2682_v3 = vld [vmem:[%s2662_s17] sm:$0xff]   ;;  %v262_v6 = vld [vmem:[%s2662_s17 + $0x8] sm:$0xff]   ;;  %vm1205_vm3 = vcmask 261120   ;;  %s1844_s10 = sshll.u32 %s2658_s13, 8 }
  0x4c   : > { %2023 = vmatpush3.bf16.msra.mxu0 %v2207_v0  ;;  %2142 = vmatpush3.bf16.msra.mxu1 %v2207_v0  ;;  %v2685_v4 = vld [vmem:[%s2662_s17 + $0x40] sm:$0xff]   ;;  %v2694_v7 = vld [vmem:[%s2662_s17 + $0x10] sm:$0xff]   ;;  %v2699_v8 = vld [vmem:[%s2662_s17 + $0x48] sm:$0xff]   ;;  %v2776_v26 = vunpack.c.l.bf16 %v2682_v3  ;;  %v2780_v28 = vunpack.c.l.bf16 %v262_v6  ;;  %v2784_v32 = vunpack.c.h.bf16 %v262_v6  ;;  %v2789_v35 = vunpack.c.h.bf16 %v2682_v3  ;;  %s3390_s11 = scalar_lea.vmem [#allocation7], %s1844_s10  ;;  %s1963_s23 = sshll.u32 %s2559_s22, 12 }
  0x4d   : > { %2024 = vmatprep.subr.bf16.mxu0 %v2208_v1  ;;  %2139 = vmatprep.subr.bf16.mxu1 %v2208_v1  ;;  %v2210_v5 = vld [vmem:[%s3607_s1] sm:$0xff]   ;;  %v2702_v9 = vld [vmem:[%s2662_s17 + $0x50] sm:$0xff]   ;;  %v2227_v10 = vld [vmem:[%s3608_s2 + $0x18] sm:$0xff]   ;;  %v2804_v50 = vunpack.c.l.bf16 %v2694_v7  ;;  %v2826_v62 = vunpack.c.h.bf16 %v2694_v7  ;;  %s1750_s26 = sshll.u32 %s3390_s11, 4  ;;  %s3556_s9 = scalar_lea.hbm %s3611_s5, %s1963_s23  ;;  %s3558_s26 = int_to_ptr.vmem [resolvable:$true] %s1750_s26 }
  0x4e   : > { %2030 = vmatprep.mubr.msk.bf16.mxu0 %vm443_vm0, %v2682_v3  ;;  %2046 = vmatprep.mubr.msk.bf16.mxu1 %vm443_vm0, %v2685_v4  ;;  %v2228_v11 = vld [vmem:[%s3608_s2 + $0x10] sm:$0xff]   ;;  %v2714_v12 = vld [vmem:[%s2662_s17 + $0x18] sm:$0xff]   ;;  %v2719_v13 = vld [vmem:[%s2662_s17 + $0x20] sm:$0xff]   ;;  %s1736_s22 = scalar_lea.sflag [#allocation4], %s2658_s13  ;;  %s2431_s15 = scalar_lea.vmem %s3558_s26, 4096 }
  0x4f   : > { %v2724_v14 = vld [vmem:[%s2662_s17 + $0x58] sm:$0xff]   ;;  %v2727_v15 = vld [vmem:[%s2662_s17 + $0x60] sm:$0xff]   ;;  %v2734_v16 = vld [vmem:[%s2662_s17 + $0x28] sm:$0xff]   ;;  %v2807_v53 = vunpack.c.l.bf16 %v2714_v12  ;;  %v2817_v58 = vunpack.c.h.bf16 %v2714_v12  ;;  %p2432_p12 = scmp.ne.s32.totalorder %s3558_s26, %s2431_s15  ;;  %p3764_p1 = scmp.ne.s32.totalorder %s3676_s30, 0 }
  0x50   : > { %2025 = vmatpush3.bf16.msra.mxu0 %v2208_v1  ;;  %2143 = vmatpush3.bf16.msra.mxu1 %v2208_v1  ;;  %v2739_v17 = vld [vmem:[%s2662_s17 + $0x30] sm:$0xff]   ;;  %v2744_v18 = vld [vmem:[%s2662_s17 + $0x68] sm:$0xff]   ;;  %v2754_v20 = vld [vmem:[%s2662_s17 + $0x38] sm:$0xff]   ;;  %s2505_s16 = smov [#allocation7]  }
  0x51   : > { %2026 = vmatprep.subr.bf16.mxu0 %v2209_v2  ;;  %2140 = vmatprep.subr.bf16.mxu1 %v2209_v2  ;;  %v2747_v19 = vld [vmem:[%s2662_s17 + $0x70] sm:$0xff]   ;;  %v2761_v21 = vld [vmem:[%s2662_s17 + $0x78] sm:$0xff]   ;;  %v2229_v22 = vld [vmem:[%s3608_s2 + $0x8] sm:$0xff]   ;;  %p2433_p7 = pnand %p2432_p12, %p3764_p1  ;;  %s2435_s7 = sshll.u32 %s2505_s16, 4  ;;  %s2436_s7 = int_to_ptr.vmem [resolvable:$false] %s2435_s7 }
  0x52   : > { %v2230_v23 = vld [vmem:[%s3608_s2] sm:$0xff]   ;;  %s2437_s12 = scalar_lea.vmem %s2436_s7, 8192  ;;  %p2438_p9 = scmp.lt.s32.totalorder %s3558_s26, %s2436_s7 }
  0x53   : > { %v2773_v24 = vld [vmem:[#allocation5] ss:$0 sm:$0xff]  ;;  %p2434_p8 = pneg %p2433_p7  ;;  %p2439_p10 = scmp.lt.s32.totalorder %s2437_s12, %s2431_s15 }
  0x54   : > { %2027 = vmatpush3.bf16.msra.mxu0 %v2209_v2  ;;  %2144 = vmatpush3.bf16.msra.mxu1 %v2209_v2 }
  0x55   : > { %2028 = vmatprep.subr.bf16.mxu0 %v2210_v5  ;;  %2141 = vmatprep.subr.bf16.mxu1 %v2210_v5  ;;  %p2440_p2 = por %p2439_p10, %p2438_p9 }
  0x57   : > { %p2441_p0 = pnand %p2440_p2, %p2434_p8 }
  0x58   : > { %2029 = vmatpush3.bf16.msra.mxu0 %v2210_v5  ;;  %2145 = vmatpush3.bf16.msra.mxu1 %v2210_v5 }
  0x59   : > { %2062 = vmatprep.subr.bf16.mxu1 %v2227_v10 }
  0x5b   : > { %2031 = vmatmul.mubr.msk.bf16.vlgmr.msra.gmra.mxu0 %vm443_vm0, %v262_v6  ;;  %2047 = vmatmul.mubr.msk.bf16.vlgmr.msra.gmra.mxu1 %vm443_vm0, %v2699_v8 }
  0x5c   : > { %2034 = vmatprep.mubr.msk.bf16.mxu0 %vm443_vm0, %v2694_v7  ;;  %2050 = vmatprep.mubr.msk.bf16.mxu1 %vm443_vm0, %v2702_v9 }
  0x5d   : > { %2063 = vmatpush3.bf16.msra.mxu1 %v2227_v10 }
  0x5e   : > { %2064 = vmatprep.subr.bf16.mxu1 %v2228_v11 }
  0x61   : > { %2065 = vmatpush3.bf16.msra.mxu1 %v2228_v11 }
  0x62   : > { %2066 = vmatprep.subr.bf16.mxu1 %v2229_v22 }
  0x63   : > { %2035 = vmatmul.mubr.msk.bf16.gmra.mxu0 %vm443_vm0, %v2714_v12  ;;  %2051 = vmatmul.mubr.msk.bf16.gmra.mxu1 %vm443_vm0, %v2724_v14 }
  0x64   : > { %2038 = vmatprep.mubr.msk.bf16.mxu0 %vm443_vm0, %v2719_v13  ;;  %2054 = vmatprep.mubr.msk.bf16.mxu1 %vm443_vm0, %v2727_v15 }
  0x65   : > { %2067 = vmatpush3.bf16.msra.mxu1 %v2229_v22 }
  0x66   : > { %2068 = vmatprep.subr.bf16.mxu1 %v2230_v23 }
  0x69   : > { %2069 = vmatpush3.bf16.msra.mxu1 %v2230_v23 }
  0x6b   : > { %2039 = vmatmul.mubr.msk.bf16.gmra.mxu0 %vm443_vm0, %v2734_v16  ;;  %2055 = vmatmul.mubr.msk.bf16.gmra.mxu1 %vm443_vm0, %v2744_v18 }
  0x6c   : > { %2042 = vmatprep.mubr.msk.bf16.mxu0 %vm443_vm0, %v2739_v17  ;;  %2058 = vmatprep.mubr.msk.bf16.mxu1 %vm443_vm0, %v2747_v19 }
  0x73   : > { %2043 = vmatmul.mubr.msk.bf16.gmra.mxu0 %vm443_vm0, %v2754_v20  ;;  %2059 = vmatmul.mubr.msk.bf16.gmra.mxu1 %vm443_vm0, %v2761_v21 }
 0x11b   : > { %v2032_v25 = vpop.f32.mrf.mxu0  ;;  %v2778_v27 = vpop.f32.mrf.mxu1 }
 0x11c   : > { %v535_v29 = vadd.f32 %v2032_v25, %v2773_v24  ;;  %v2846_v25 = vunpack.c.l.bf16 %v2734_v16 }
 0x11d   : > { %v526_v30 = vpop.f32.mrf.mxu0  ;;  %v2786_v33 = vpop.f32.mrf.mxu1 }
 0x11e   : > { %v527_v31 = vadd.f32 %v2773_v24, %v526_v30  ;;  %v655_v39 = vadd.f32 %v535_v29, %v2780_v28 }
 0x11f   : > { %v2033_v34 = vpop.f32.mrf.mxu0  ;;  %v2793_v38 = vpop.f32.mrf.mxu1 }
 0x120   : > { %v653_v36 = vadd.f32 %v527_v31, %v2776_v26  ;;  %v538_v37 = vadd.f32 %v2033_v34, %v2773_v24  ;;  %v687_v49 = vmax.f32 %v655_v39, 0.0  ;;  %v2852_v34 = vunpack.c.l.bf16 %v2719_v13 }
 0x121   : > { %v529_v40 = vpop.f32.mrf.mxu0  ;;  %v2798_v43 = vpop.f32.mrf.mxu1 }
 0x122   : > { %v656_v41 = vadd.f32 %v538_v37, %v2784_v32  ;;  %v530_v42 = vadd.f32 %v2773_v24, %v529_v40  ;;  %v685_v45 = vmax.f32 %v653_v36, 0.0  ;;  %v2831_v0 = vadd.f32 %v687_v49, %v2780_v28 }
 0x123   : > { %v2036_v44 = vpop.f32.mrf.mxu0  ;;  %v2801_v48 = vpop.f32.mrf.mxu1  ;;  %v2856_v37 = vunpack.c.h.bf16 %v2734_v16 }
 0x124   : > { %v688_v46 = vmax.f32 %v656_v41, 0.0  ;;  %v654_v47 = vadd.f32 %v530_v42, %v2789_v35  ;;  %v551_v54 = vadd.f32 %v2036_v44, %v2773_v24  ;;  %v2820_v60 = vadd.f32 %v685_v45, %v2776_v26 }
 0x125   : > { %v542_v51 = vpop.f32.mrf.mxu0  ;;  %v2811_v56 = vpop.f32.mrf.mxu1  ;;  %3686 = vst [vmem:[#allocation11_spill] sm:$0xff] %v2856_v37  ;;  %v2861_v44 = vunpack.c.l.bf16 %v2685_v4 }
 0x126   : > { %v686_v52 = vmax.f32 %v654_v47, 0.0  ;;  %v543_v55 = vadd.f32 %v2773_v24, %v542_v51  ;;  %v2814_v57 = vadd.f32 %v688_v46, %v2784_v32  ;;  %v659_v5 = vadd.f32 %v551_v54, %v2807_v53 }
 0x127   : > { %v2037_v59 = vpop.f32.mrf.mxu0  ;;  %v2828_v63 = vpop.f32.mrf.mxu1  ;;  %3687 = vst [vmem:[#allocation12_spill] sm:$0xff] %v2861_v44  ;;  %v2864_v46 = vunpack.c.h.bf16 %v2685_v4 }
 0x128   : > { %v2823_v61 = vadd.f32 %v686_v52, %v2789_v35  ;;  %v657_v1 = vadd.f32 %v543_v55, %v2804_v50  ;;  %v554_v2 = vadd.f32 %v2037_v59, %v2773_v24  ;;  %v750_v7 = vpack.c.bf16 %v2814_v57, %v2831_v0 }
 0x129   : > { %v545_v3 = vpop.f32.mrf.mxu0  ;;  %v2839_v11 = vpop.f32.mrf.mxu1  ;;  %v691_v39 = vmax.f32 %v659_v5, 0.0  ;;  %3688 = vst [vmem:[#allocation13_spill] sm:$0xff] %v2864_v46  ;;  %v2880_v55 = vunpack.c.h.bf16 %v2719_v13  ;;  %v591_v59 = vadd.f32 %v2773_v24, %v2786_v33  ;;  %v2890_v5 = vunpack.c.l.bf16 %v2754_v20 }
 0x12a   : > { %v546_v6 = vadd.f32 %v2773_v24, %v545_v3  ;;  %v749_v10 = vpack.c.bf16 %v2823_v61, %v2820_v60  ;;  %v660_v12 = vadd.f32 %v554_v2, %v2817_v58  ;;  %v689_v30 = vmax.f32 %v657_v1, 0.0 }
 0x12b   : > { %v2040_v22 = vpop.f32.mrf.mxu0  ;;  %v2849_v29 = vpop.f32.mrf.mxu1  ;;  %3689 = vst [vmem:[#allocation14_spill] sm:$0xff] %v2880_v55  ;;  %v2885_v1 = vadd.f32 %v691_v39, %v2807_v53  ;;  %v594_v33 = vadd.f32 %v2773_v24, %v2798_v43  ;;  %v2913_v43 = vunpack.c.l.bf16 %v2699_v8 }
 0x12c   : > { %v658_v23 = vadd.f32 %v546_v6, %v2826_v62  ;;  %2070 = vmatprep.mubr.msk.bf16.mxu1 %vm443_vm0, %v749_v10  ;;  %v692_v31 = vmax.f32 %v660_v12, 0.0  ;;  %v567_v41 = vadd.f32 %v2040_v22, %v2773_v24  ;;  %v2876_v52 = vadd.f32 %v689_v30, %v2804_v50 }
 0x12d   : > { %v558_v36 = vpop.f32.mrf.mxu0  ;;  %2071 = vmatmul.mubr.msk.bf16.vlgmr.msra.gmra.mxu1 %vm443_vm0, %v750_v7  ;;  %v2873_v51 = vpop.f32.mrf.mxu1  ;;  %v2896_v7 = vunpack.c.l.bf16 %v2739_v17  ;;  %v2906_v30 = vunpack.c.h.bf16 %v2739_v17  ;;  %3692 = vst [vmem:[#allocation17_spill] sm:$0xff] %v2913_v43  ;;  %v2920_v17 = vunpack.c.h.bf16 %v2699_v8 }
 0x12e   : > { %v690_v40 = vmax.f32 %v658_v23, 0.0  ;;  %v559_v42 = vadd.f32 %v2773_v24, %v558_v36  ;;  %v2867_v47 = vadd.f32 %v692_v31, %v2817_v58  ;;  %v663_v2 = vadd.f32 %v567_v41, %v2846_v25 }
 0x12f   : > { %v2041_v45 = vpop.f32.mrf.mxu0  ;;  %v2903_v23 = vunpack.c.h.bf16 %v2754_v20  ;;  %3691 = vst [vmem:[#allocation16_spill] sm:$0xff] %v2906_v30  ;;  %v2908_v31 = vpop.f32.mrf.mxu1  ;;  %v669_v41 = vadd.f32 %v591_v59, %v2861_v44  ;;  %3693 = vst [vmem:[#allocation18_spill] sm:$0xff] %v2920_v17 }
 0x130   : > { %v2870_v49 = vadd.f32 %v690_v40, %v2826_v62  ;;  %v570_v16 = vadd.f32 %v2041_v45, %v2773_v24  ;;  %v661_v54 = vadd.f32 %v559_v42, %v2852_v34  ;;  %v752_v22 = vpack.c.bf16 %v2867_v47, %v2885_v1 }
 0x131   : > { %v561_v4 = vpop.f32.mrf.mxu0  ;;  %3690 = vst [vmem:[#allocation15_spill] sm:$0xff] %v2903_v23  ;;  %v695_v42 = vmax.f32 %v663_v2, 0.0 }
 0x132   : > { %v664_v3 = vadd.f32 %v570_v16, %v2856_v37  ;;  %v562_v6 = vadd.f32 %v2773_v24, %v561_v4  ;;  %v751_v13 = vpack.c.bf16 %v2870_v49, %v2876_v52  ;;  %v693_v36 = vmax.f32 %v661_v54, 0.0 }
 0x133   : > { %v2044_v10 = vpop.f32.mrf.mxu0  ;;  %v670_v4 = vadd.f32 %v594_v33, %v2864_v46 }
 0x134   : > { %v696_v12 = vmax.f32 %v664_v3, 0.0  ;;  %v662_v39 = vadd.f32 %v562_v6, %v2880_v55  ;;  %2074 = vmatprep.mubr.msk.bf16.mxu1 %vm443_vm0, %v751_v13  ;;  %v583_v20 = vadd.f32 %v2044_v10, %v2773_v24  ;;  %v2924_v3 = vunpack.c.l.bf16 %v2702_v9  ;;  %v625_v13 = vpop.f32.mrf.mxu1 }
 0x135   : > { %v574_v40 = vpop.f32.mrf.mxu0  ;;  %2075 = vmatmul.mubr.msk.bf16.gmra.mxu1 %vm443_vm0, %v752_v22  ;;  %v2927_v6 = vunpack.c.h.bf16 %v2702_v9  ;;  %v599_v10 = vadd.f32 %v2778_v27, %v2773_v24  ;;  %v2937_v22 = vadd.f32 %v693_v36, %v2852_v34 }
 0x136   : > { %v575_v45 = vadd.f32 %v2773_v24, %v574_v40  ;;  %v694_v16 = vmax.f32 %v662_v39, 0.0  ;;  %3694 = vst [vmem:[#allocation19_spill] sm:$0xff] %v2924_v3  ;;  %v2930_v59 = vadd.f32 %v696_v12, %v2856_v37  ;;  %v701_v39 = vmax.f32 %v669_v41, 0.0 }
 0x137   : > { %v2045_v54 = vpop.f32.mrf.mxu0  ;;  %3695 = vst [vmem:[#allocation20_spill] sm:$0xff] %v2927_v6  ;;  %v602_v12 = vadd.f32 %v2793_v38, %v2773_v24  ;;  %v2945_v40 = vadd.f32 %v695_v42, %v2846_v25  ;;  %v702_v37 = vmax.f32 %v670_v4, 0.0  ;;  %v607_v41 = vadd.f32 %v2773_v24, %v2811_v56 }
 0x138   : > { %v665_v2 = vadd.f32 %v575_v45, %v2896_v7  ;;  %v586_v8 = vadd.f32 %v2045_v54, %v2773_v24  ;;  %v2940_v33 = vadd.f32 %v694_v16, %v2880_v55  ;;  %v667_v45 = vadd.f32 %v583_v20, %v2890_v5 }
 0x139   : > { %v577_v9 = vpop.f32.mrf.mxu0  ;;  %v610_v16 = vadd.f32 %v2773_v24, %v2839_v11  ;;  %v754_v20 = vpack.c.bf16 %v2930_v59, %v2945_v40  ;;  %v2965_v56 = vadd.f32 %v701_v39, %v2861_v44  ;;  %v2968_v11 = vadd.f32 %v702_v37, %v2864_v46 }
 0x13a   : > { %3696 = vst [vmem:[#allocation21_spill] sm:$0xff] %v2940_v33  ;;  %v668_v27 = vadd.f32 %v586_v8, %v2903_v23  ;;  %v578_v54 = vadd.f32 %v2773_v24, %v577_v9  ;;  %v753_v36 = vpack.c.bf16 %v2940_v33, %v2937_v22  ;;  %v697_v38 = vmax.f32 %v665_v2, 0.0  ;;  %v2959_v8 = vpop.f32.mrf.mxu1 }
 0x13b   : > { %v699_v4 = vmax.f32 %v667_v45, 0.0  ;;  %v671_v9 = vadd.f32 %v599_v10, %v2913_v43  ;;  %3697 = vst [vmem:[#allocation22_spill] sm:$0xff] %v2965_v56  ;;  %3698 = vst [vmem:[#allocation23_spill] sm:$0xff] %v2968_v11  ;;  %v673_v2 = vadd.f32 %v607_v41, %v2924_v3  ;;  %v2986_v37 = vunpack.c.h.bf16 %v2724_v14 }
 0x13c   : > { %v700_v55 = vmax.f32 %v668_v27, 0.0  ;;  %v666_v42 = vadd.f32 %v578_v54, %v2906_v30  ;;  %2078 = vmatprep.mubr.msk.bf16.mxu1 %vm443_vm0, %v753_v36  ;;  %v674_v27 = vadd.f32 %v610_v16, %v2927_v6  ;;  %v2973_v54 = vadd.f32 %v697_v38, %v2896_v7  ;;  %v638_v39 = vpop.f32.mrf.mxu1 }
 0x13d   : > { %2079 = vmatmul.mubr.msk.bf16.gmra.mxu1 %vm443_vm0, %v754_v20  ;;  %v672_v36 = vadd.f32 %v602_v12, %v2920_v17  ;;  %3702 = vst [vmem:[#allocation27_spill] sm:$0xff] %v2986_v37  ;;  %v2989_v41 = vunpack.c.l.bf16 %v2727_v15  ;;  %v2992_v16 = vunpack.c.h.bf16 %v2727_v15  ;;  %v623_v38 = vadd.f32 %v2773_v24, %v2873_v51 }
 0x13e   : > { %v698_v33 = vmax.f32 %v666_v42, 0.0  ;;  %v2976_v45 = vadd.f32 %v700_v55, %v2903_v23  ;;  %v2983_v42 = vunpack.c.l.bf16 %v2724_v14  ;;  %v2995_v55 = vadd.f32 %v699_v4, %v2890_v5  ;;  %v2061_v51 = vpop.f32.mrf.mxu1 }
 0x13f   : > { %3703 = vst [vmem:[#allocation28_spill] sm:$0xff] %v2989_v41  ;;  %3704 = vst [vmem:[#allocation29_spill] sm:$0xff] %v2992_v16  ;;  %v705_v20 = vmax.f32 %v673_v2, 0.0  ;;  %v706_v46 = vmax.f32 %v674_v27, 0.0  ;;  %v757_v14 = vpack.c.bf16 %v2968_v11, %v2965_v56  ;;  %v626_v44 = vadd.f32 %v2773_v24, %v625_v13 }
 0x140   : > { %3699 = vst [vmem:[#allocation24_spill] sm:$0xff] %v2976_v45  ;;  %v2979_v10 = vadd.f32 %v698_v33, %v2906_v30  ;;  %3701 = vst [vmem:[#allocation26_spill] sm:$0xff] %v2983_v42  ;;  %v703_v33 = vmax.f32 %v671_v9, 0.0  ;;  %v704_v30 = vmax.f32 %v672_v36, 0.0  ;;  %v615_v15 = vadd.f32 %v2801_v48, %v2773_v24 }
 0x141   : > { %v618_v4 = vadd.f32 %v2828_v63, %v2773_v24  ;;  %v756_v9 = vpack.c.bf16 %v2976_v45, %v2995_v55  ;;  %v677_v2 = vadd.f32 %v623_v38, %v2989_v41  ;;  %v3014_v27 = vadd.f32 %v705_v20, %v2924_v3 }
 0x142   : > { %3700 = vst [vmem:[#allocation25_spill] sm:$0xff] %v2979_v10  ;;  %v755_v12 = vpack.c.bf16 %v2979_v10, %v2973_v54  ;;  %v3017_v13 = vadd.f32 %v706_v46, %v2927_v6  ;;  %v678_v48 = vadd.f32 %v626_v44, %v2992_v16  ;;  %v3022_v63 = vadd.f32 %v703_v33, %v2913_v43 }
 0x143   : > { %3705 = vst [vmem:[#allocation30_spill] sm:$0xff] %v3014_v27  ;;  %v3025_v36 = vadd.f32 %v704_v30, %v2920_v17  ;;  %v676_v38 = vadd.f32 %v618_v4, %v2986_v37  ;;  %v3030_v20 = vunpack.c.l.bf16 %v2744_v18  ;;  %v3033_v46 = vunpack.c.h.bf16 %v2744_v18 }
 0x144   : > { %2082 = vmatprep.mubr.msk.bf16.mxu1 %vm443_vm0, %v755_v12  ;;  %3706 = vst [vmem:[#allocation31_spill] sm:$0xff] %v3017_v13  ;;  %3707 = vst [vmem:[#allocation32_spill] sm:$0xff] %v3022_v63  ;;  %v675_v12 = vadd.f32 %v615_v15, %v2983_v42  ;;  %v631_v44 = vadd.f32 %v2849_v29, %v2773_v24  ;;  %v3038_v33 = vunpack.c.l.bf16 %v2747_v19  ;;  %v3041_v30 = vunpack.c.h.bf16 %v2747_v19 }
 0x145   : > { %2083 = vmatmul.mubr.msk.bf16.gmra.mxu1 %vm443_vm0, %v756_v9  ;;  %3708 = vst [vmem:[#allocation33_spill] sm:$0xff] %v3025_v36  ;;  %v641_v9 = vpop.f32.mrf.mxu1  ;;  %3709 = vst [vmem:[#allocation34_spill] sm:$0xff] %v3030_v20  ;;  %v710_v15 = vmax.f32 %v678_v48, 0.0  ;;  %v759_v4 = vpack.c.bf16 %v3017_v13, %v3014_v27  ;;  %v639_v6 = vadd.f32 %v2773_v24, %v638_v39  ;;  %v708_v11 = vmax.f32 %v676_v38, 0.0 }
 0x146   : > { %2086 = vmatprep.mubr.msk.bf16.mxu1 %vm443_vm0, %v757_v14  ;;  %3710 = vst [vmem:[#allocation35_spill] sm:$0xff] %v3033_v46  ;;  %v709_v14 = vmax.f32 %v677_v2, 0.0  ;;  %3711 = vst [vmem:[#allocation36_spill] sm:$0xff] %v3038_v33  ;;  %v642_v3 = vadd.f32 %v2773_v24, %v641_v9  ;;  %v707_v18 = vmax.f32 %v675_v12, 0.0  ;;  %v634_v29 = vadd.f32 %v2908_v31, %v2773_v24 }
 0x147   : > { %3712 = vst [vmem:[#allocation37_spill] sm:$0xff] %v3041_v30  ;;  %v758_v2 = vpack.c.bf16 %v3025_v36, %v3022_v63  ;;  %v679_v17 = vadd.f32 %v631_v44, %v3030_v20  ;;  %v3057_v48 = vadd.f32 %v710_v15, %v2992_v16  ;;  %v681_v39 = vadd.f32 %v639_v6, %v3038_v33 }
 0x148   : > { %v3054_v19 = vadd.f32 %v709_v14, %v2989_v41  ;;  %v682_v12 = vadd.f32 %v642_v3, %v3041_v30  ;;  %v3063_v31 = vadd.f32 %v707_v18, %v2983_v42  ;;  %v3066_v38 = vadd.f32 %v708_v11, %v2986_v37 }
 0x149   : > { %3714 = vst [vmem:[#allocation39_spill] sm:$0xff] %v3057_v48  ;;  %v680_v9 = vadd.f32 %v634_v29, %v3033_v46  ;;  %v3070_v44 = vunpack.c.l.bf16 %v2761_v21  ;;  %v3073_v14 = vunpack.c.h.bf16 %v2761_v21  ;;  %v711_v15 = vmax.f32 %v679_v17, 0.0 }
 0x14a   : > { %3713 = vst [vmem:[#allocation38_spill] sm:$0xff] %v3054_v19  ;;  %3715 = vst [vmem:[#allocation40_spill] sm:$0xff] %v3063_v31  ;;  %v761_v3 = vpack.c.bf16 %v3057_v48, %v3054_v19  ;;  %v647_v18 = vadd.f32 %v2959_v8, %v2773_v24  ;;  %v650_v11 = vadd.f32 %v2061_v51, %v2773_v24 }
 0x14b   : > { %3716 = vst [vmem:[#allocation41_spill] sm:$0xff] %v3066_v38  ;;  %3717 = vst [vmem:[#allocation42_spill] sm:$0xff] %v3070_v44  ;;  %v712_v6 = vmax.f32 %v680_v9, 0.0  ;;  %v760_v29 = vpack.c.bf16 %v3066_v38, %v3063_v31 }
 0x14c   : > { %3718 = vst [vmem:[#allocation43_spill] sm:$0xff] %v3073_v14  ;;  %v683_v24 = vadd.f32 %v647_v18, %v3070_v44  ;;  %v684_v51 = vadd.f32 %v650_v11, %v3073_v14  ;;  %v2231_v18 = vld [vmem:[%s3609_s3 + $0x8] sm:$0xff]   ;;  %v2232_v11 = vld [vmem:[%s3609_s3] sm:$0xff]  }
 0x14d   : > { %2087 = vmatmul.mubr.msk.bf16.gmra.mxu1 %vm443_vm0, %v758_v2  ;;  %v714_v2 = vmax.f32 %v682_v12, 0.0  ;;  %v3094_v8 = vadd.f32 %v712_v6, %v3033_v46  ;;  %2102 = vmatprep.subr.bf16.mxu0 %v2231_v18 }
 0x14e   : > { %2090 = vmatprep.mubr.msk.bf16.mxu1 %vm443_vm0, %v759_v4  ;;  %v713_v4 = vmax.f32 %v681_v39, 0.0  ;;  %v3091_v39 = vadd.f32 %v711_v15, %v3030_v20  ;;  %v715_v9 = vmax.f32 %v683_v24, 0.0  ;;  %2103 = vmatpush3.bf16.msra.mxu0 %v2231_v18 }
 0x14f   : > { %v3087_v17 = vadd.f32 %v714_v2, %v3041_v30  ;;  %3722 = vst [vmem:[#allocation47_spill] sm:$0xff] %v3094_v8  ;;  %2104 = vmatprep.subr.bf16.mxu0 %v2232_v11 }
 0x150   : > { %v3084_v21 = vadd.f32 %v713_v4, %v3038_v33  ;;  %3721 = vst [vmem:[#allocation46_spill] sm:$0xff] %v3091_v39  ;;  %v716_v4 = vmax.f32 %v684_v51, 0.0  ;;  %v762_v2 = vpack.c.bf16 %v3094_v8, %v3091_v39  ;;  %v3105_v15 = vadd.f32 %v715_v9, %v3070_v44  ;;  %v3119_v51 = vld [vmem:[#allocation5 + $0x1] ss:$0 sm:$0xff] }
 0x151   : > { %3720 = vst [vmem:[#allocation45_spill] sm:$0xff] %v3087_v17 }
 0x152   : > { %3719 = vst [vmem:[#allocation44_spill] sm:$0xff] %v3084_v21  ;;  %v763_v12 = vpack.c.bf16 %v3087_v17, %v3084_v21  ;;  %3723 = vst [vmem:[#allocation48_spill] sm:$0xff] %v3105_v15  ;;  %2105 = vmatpush3.bf16.msra.mxu0 %v2232_v11 }
 0x155   : > { %2091 = vmatmul.mubr.msk.bf16.gmra.mxu1 %vm443_vm0, %v760_v29 }
 0x156   : > { %2094 = vmatprep.mubr.msk.bf16.mxu1 %vm443_vm0, %v761_v3  ;;  %v3108_v3 = vadd.f32 %v716_v4, %v3073_v14 }
 0x158   : > { %3724 = vst [vmem:[#allocation49_spill] sm:$0xff] %v3108_v3  ;;  %v764_v6 = vpack.c.bf16 %v3108_v3, %v3105_v15 }
 0x15d   : > { %2095 = vmatmul.mubr.msk.bf16.gmra.mxu1 %vm443_vm0, %v762_v2 }
 0x15e   : > { %2098 = vmatprep.mubr.msk.bf16.mxu1 %vm443_vm0, %v763_v12 }
 0x165   : > { %2099 = vmatmul.mubr.msk.bf16.gmra.mxu1 %vm443_vm0, %v764_v6 }
 0x1ed   : > { %v2072_v29 = vpop.f32.mrf.mxu1 }
 0x1ee   : > { %v3125_v2 = vadd.f32 %v2072_v29, %v3119_v51 }
 0x1ef   : > { %v883_v24 = vpop.f32.mrf.mxu1 }
 0x1f0   : > { %v3122_v9 = vadd.f32 %v3119_v51, %v883_v24  ;;  %v1046_v14 = vsel %vm1042_vm1, %v3125_v2, 0.0 }
 0x1f1   : > { %v2073_v12 = vpop.f32.mrf.mxu1 }
 0x1f2   : > { %v1043_v18 = vsel %vm1042_vm1, %v3122_v9, 0.0  ;;  %v3133_v11 = vadd.f32 %v2073_v12, %v3119_v51 }
 0x1f3   : > { %v886_v4 = vpop.f32.mrf.mxu1 }
 0x1f4   : > { %v3128_v6 = vadd.f32 %v3119_v51, %v886_v4  ;;  %v1048_v33 = vsel %vm1042_vm1, %v3133_v11, 0.0 }
 0x1f5   : > { %v2076_v17 = vpop.f32.mrf.mxu1 }
 0x1f6   : > { %v1044_v30 = vsel %vm1042_vm1, %v3128_v6, 0.0  ;;  %v3147_v16 = vadd.f32 %v2076_v17, %v3119_v51 }
 0x1f7   : > { %v1045_v24 = vadd.f32 %v1044_v30, %v1043_v18  ;;  %v899_v29 = vpop.f32.mrf.mxu1 }
 0x1f8   : > { %v3140_v4 = vadd.f32 %v3119_v51, %v899_v29 }
 0x1f9   : > { %v1047_v3 = vadd.f32 %v1046_v14, %v1045_v24  ;;  %v2077_v21 = vpop.f32.mrf.mxu1 }
 0x1fa   : > { %v1050_v12 = vsel %vm1042_vm1, %v3140_v4, 0.0  ;;  %v3153_v24 = vadd.f32 %v2077_v21, %v3119_v51 }
 0x1fb   : > { %v1049_v44 = vadd.f32 %v1048_v33, %v1047_v3  ;;  %v902_v15 = vpop.f32.mrf.mxu1  ;;  %v1054_v3 = vsel %vm1042_vm1, %v3147_v16, 0.0 }
 0x1fc   : > { %v3150_v18 = vadd.f32 %v3119_v51, %v902_v15 }
 0x1fd   : > { %v1051_v30 = vadd.f32 %v1050_v12, %v1049_v44  ;;  %v2080_v14 = vpop.f32.mrf.mxu1  ;;  %v1056_v44 = vsel %vm1042_vm1, %v3153_v24, 0.0 }
 0x1fe   : > { %v1052_v29 = vsel %vm1042_vm1, %v3150_v18, 0.0  ;;  %v3165_v21 = vadd.f32 %v2080_v14, %v3119_v51 }
 0x1ff   : > { %v1053_v48 = vadd.f32 %v1052_v29, %v1051_v30  ;;  %v915_v33 = vpop.f32.mrf.mxu1 }
 0x200   : > { %v3162_v17 = vadd.f32 %v3119_v51, %v915_v33  ;;  %v1067_v14 = vsel %vm1042_vm1, %v3165_v21, 0.0 }
 0x201   : > { %v1055_v46 = vadd.f32 %v1054_v3, %v1053_v48  ;;  %v2081_v8 = vpop.f32.mrf.mxu1 }
 0x202   : > { %v1064_v48 = vsel %vm1042_vm1, %v3162_v17, 0.0  ;;  %v3173_v3 = vadd.f32 %v2081_v8, %v3119_v51 }
 0x203   : > { %v1057_v15 = vadd.f32 %v1056_v44, %v1055_v46  ;;  %v918_v12 = vpop.f32.mrf.mxu1 }
 0x204   : > { %v3168_v41 = vadd.f32 %v3119_v51, %v918_v12  ;;  %v1069_v37 = vsel %vm1042_vm1, %v3173_v3, 0.0 }
 0x205   : > { %v1058_v30 = vrot.slane %v1057_v15, 4  ;;  %v2084_v29 = vpop.f32.mrf.mxu1 }
 0x206   : > { %v1065_v33 = vsel %vm1042_vm1, %v3168_v41, 0.0  ;;  %v3185_v42 = vadd.f32 %v2084_v29, %v3119_v51 }
 0x207   : > { %v1059_v19 = vadd.f32 %v1058_v30, %v1057_v15  ;;  %v1066_v46 = vadd.f32 %v1065_v33, %v1064_v48  ;;  %v931_v44 = vpop.f32.mrf.mxu1 }
 0x208   : > { %v3180_v12 = vadd.f32 %v3119_v51, %v931_v44  ;;  %v1075_v29 = vsel %vm1042_vm1, %v3185_v42, 0.0 }
 0x209   : > { %v1060_v20 = vrot.slane %v1059_v19, 2  ;;  %v1068_v39 = vadd.f32 %v1067_v14, %v1066_v46  ;;  %v2085_v13 = vpop.f32.mrf.mxu1 }
 0x20a   : > { %v1071_v15 = vsel %vm1042_vm1, %v3180_v12, 0.0  ;;  %v3193_v46 = vadd.f32 %v2085_v13, %v3119_v51  ;;  %v1010_v13 = vmax.f32 %v3122_v9, 0.0 }
 0x20b   : > { %v1061_v8 = vadd.f32 %v1060_v20, %v1059_v19  ;;  %v1070_v38 = vadd.f32 %v1069_v37, %v1068_v39  ;;  %v934_v27 = vpop.f32.mrf.mxu1 }
 0x20c   : > { %v3190_v30 = vadd.f32 %v3119_v51, %v934_v27  ;;  %v1077_v36 = vsel %vm1042_vm1, %v3193_v46, 0.0 }
 0x20d   : > { %v1062_v48 = vrot.slane %v1061_v8, 1  ;;  %v1072_v33 = vadd.f32 %v1071_v15, %v1070_v38  ;;  %v2088_v44 = vpop.f32.mrf.mxu1  ;;  %v1012_v15 = vmax.f32 %v3125_v2, 0.0 }
 0x20e   : > { %v1073_v20 = vsel %vm1042_vm1, %v3190_v30, 0.0 }
 0x20f   : > { %v1063_v37 = vadd.f32 %v1062_v48, %v1061_v8  ;;  %v1074_v19 = vadd.f32 %v1073_v20, %v1072_v33  ;;  %v947_v39 = vpop.f32.mrf.mxu1  ;;  %v1013_v8 = vmax.f32 %v3133_v11, 0.0  ;;  %v1011_v48 = vmax.f32 %v3128_v6, 0.0 }
 0x210   : > { %v3200_v27 = vadd.f32 %v3119_v51, %v947_v39  ;;  %v1015_v39 = vmax.f32 %v3150_v18, 0.0 }
 0x211   : > { %v1128_v14 = vmul.f32 0.015625, %v1063_v37  ;;  %v1076_v31 = vadd.f32 %v1075_v29, %v1074_v19  ;;  %v2089_v38 = vpop.f32.mrf.mxu1  ;;  %v1014_v19 = vmax.f32 %v3140_v4, 0.0  ;;  %v3211_v29 = vadd.f32 %v2088_v44, %v3119_v51 }
 0x212   : > { %v1085_v56 = vsel %vm1042_vm1, %v3200_v27, 0.0  ;;  %v3222_v4 = vadd.f32 %v2089_v38, %v3119_v51 }
 0x213   : > { %v1132_v33 = vmax.f32 %v1128_v14, 0.0  ;;  %v1078_v20 = vadd.f32 %v1077_v36, %v1076_v31  ;;  %v950_v37 = vpop.f32.mrf.mxu1 }
 0x214   : > { %v3214_v9 = vadd.f32 %v3119_v51, %v950_v37 }
 0x215   : > { %v1079_v2 = vrot.slane %v1078_v20, 4  ;;  %v2092_v11 = vpop.f32.mrf.mxu1  ;;  %v1137_v6 = vsel %vm1136_vm2, %v1010_v13, %v1132_v33  ;;  %v1138_v36 = vsel %vm1136_vm2, %v1011_v48, %v1132_v33  ;;  %v1142_v31 = vsel %vm1136_vm2, %v1015_v39, %v1132_v33 }
 0x216   : > { %v1086_v18 = vsel %vm1042_vm1, %v3214_v9, 0.0  ;;  %v1169_v44 = vpack.c.bf16 %v1138_v36, %v1137_v6  ;;  %v1139_v63 = vsel %vm1136_vm2, %v1012_v15, %v1132_v33  ;;  %v1140_v10 = vsel %vm1136_vm2, %v1013_v8, %v1132_v33 }
 0x217   : > { %v1080_v14 = vadd.f32 %v1079_v2, %v1078_v20  ;;  %v1087_v37 = vadd.f32 %v1086_v18, %v1085_v56  ;;  %v963_v43 = vpop.f32.mrf.mxu1  ;;  %v1088_v13 = vsel %vm1042_vm1, %v3211_v29, 0.0  ;;  %v1170_v38 = vpack.c.bf16 %v1140_v10, %v1139_v63 }
 0x218   : > { %v3231_v48 = vadd.f32 %v3119_v51, %v963_v43  ;;  %2106 = vmatprep.mubr.msk.bf16.mxu0 %vm1205_vm3, %v1169_v44  ;;  %v1141_v20 = vsel %vm1136_vm2, %v1014_v19, %v1132_v33  ;;  %v1090_v56 = vsel %vm1042_vm1, %v3222_v4, 0.0  ;;  %v1016_v8 = vmax.f32 %v3147_v16, 0.0 }
 0x219   : > { %v1081_v39 = vrot.slane %v1080_v14, 2  ;;  %v1089_v23 = vadd.f32 %v1088_v13, %v1087_v37  ;;  %v2093_v45 = vpop.f32.mrf.mxu1  ;;  %2107 = vmatmul.mubr.msk.bf16.vlgmr.msra.gmra.mxu0 %vm1205_vm3, %v1170_v38  ;;  %v1171_v15 = vpack.c.bf16 %v1142_v31, %v1141_v20  ;;  %v1017_v2 = vmax.f32 %v3153_v24, 0.0 }
 0x21a   : > { %v3241_v10 = vadd.f32 %v2092_v11, %v3119_v51  ;;  %v1092_v63 = vsel %vm1042_vm1, %v3231_v48, 0.0  ;;  %v1143_v16 = vsel %vm1136_vm2, %v1016_v8, %v1132_v33 }
 0x21b   : > { %v1082_v43 = vadd.f32 %v1081_v39, %v1080_v14  ;;  %v1091_v6 = vadd.f32 %v1090_v56, %v1089_v23  ;;  %v966_v36 = vpop.f32.mrf.mxu1  ;;  %2110 = vmatprep.mubr.msk.bf16.mxu0 %vm1205_vm3, %v1171_v15  ;;  %v1144_v24 = vsel %vm1136_vm2, %v1017_v2, %v1132_v33  ;;  %v3252_v23 = vadd.f32 %v2093_v45, %v3119_v51 }
 0x21c   : > { %v3247_v19 = vadd.f32 %v3119_v51, %v966_v36  ;;  %v1096_v38 = vsel %vm1042_vm1, %v3241_v10, 0.0  ;;  %v1172_v39 = vpack.c.bf16 %v1144_v24, %v1143_v16  ;;  %v1020_v33 = vmax.f32 %v3165_v21, 0.0 }
 0x21d   : > { %v1083_v18 = vrot.slane %v1082_v43, 1  ;;  %v1093_v31 = vadd.f32 %v1092_v63, %v1091_v6  ;;  %v2096_v44 = vpop.f32.mrf.mxu1  ;;  %v1018_v45 = vmax.f32 %v3162_v17, 0.0  ;;  %v1098_v2 = vsel %vm1042_vm1, %v3252_v23, 0.0 }
 0x21e   : > { %v1094_v11 = vsel %vm1042_vm1, %v3247_v19, 0.0  ;;  %v1019_v6 = vmax.f32 %v3168_v41, 0.0  ;;  %v1023_v16 = vmax.f32 %v3190_v30, 0.0  ;;  %v3271_v21 = vadd.f32 %v2096_v44, %v3119_v51 }
 0x21f   : > { %v1084_v14 = vadd.f32 %v1083_v18, %v1082_v43  ;;  %v1095_v37 = vadd.f32 %v1094_v11, %v1093_v31  ;;  %v979_v13 = vpop.f32.mrf.mxu1  ;;  %v1021_v43 = vmax.f32 %v3173_v3, 0.0  ;;  %v1022_v31 = vmax.f32 %v3180_v12, 0.0 }
 0x220   : > { %v3259_v15 = vadd.f32 %v3119_v51, %v979_v13 }
 0x221   : > { %v1129_v20 = vmul.f32 0.015625, %v1084_v14  ;;  %v1097_v56 = vadd.f32 %v1096_v38, %v1095_v37  ;;  %v2097_v8 = vpop.f32.mrf.mxu1  ;;  %2111 = vmatmul.mubr.msk.bf16.gmra.mxu0 %vm1205_vm3, %v1172_v39 }
 0x222   : > { %v1106_v11 = vsel %vm1042_vm1, %v3259_v15, 0.0  ;;  %v3282_v12 = vadd.f32 %v2097_v8, %v3119_v51 }
 0x223   : > { %v1133_v36 = vmax.f32 %v1129_v20, 0.0  ;;  %v1099_v63 = vadd.f32 %v1098_v2, %v1097_v56  ;;  %v982_v18 = vpop.f32.mrf.mxu1 }
 0x224   : > { %v3274_v17 = vadd.f32 %v3119_v51, %v982_v18 }
 0x225   : > { %v1100_v24 = vrot.slane %v1099_v63, 4  ;;  %v2100_v3 = vpop.f32.mrf.mxu1  ;;  %v1145_v41 = vsel %vm1136_vm2, %v1018_v45, %v1133_v36  ;;  %v1146_v14 = vsel %vm1136_vm2, %v1019_v6, %v1133_v36  ;;  %v1150_v37 = vsel %vm1136_vm2, %v1023_v16, %v1133_v36 }
 0x226   : > { %v1107_v30 = vsel %vm1042_vm1, %v3274_v17, 0.0  ;;  %v1173_v44 = vpack.c.bf16 %v1146_v14, %v1145_v41  ;;  %v1147_v20 = vsel %vm1136_vm2, %v1020_v33, %v1133_v36  ;;  %v1148_v56 = vsel %vm1136_vm2, %v1021_v43, %v1133_v36 }
 0x227   : > { %v1101_v13 = vadd.f32 %v1100_v24, %v1099_v63  ;;  %v1108_v38 = vadd.f32 %v1107_v30, %v1106_v11  ;;  %v995_v39 = vpop.f32.mrf.mxu1  ;;  %v1109_v45 = vsel %vm1042_vm1, %v3271_v21, 0.0  ;;  %v1174_v8 = vpack.c.bf16 %v1148_v56, %v1147_v20 }
 0x228   : > { %v3291_v2 = vadd.f32 %v3119_v51, %v995_v39  ;;  %2114 = vmatprep.mubr.msk.bf16.mxu0 %vm1205_vm3, %v1173_v44  ;;  %v1149_v63 = vsel %vm1136_vm2, %v1022_v31, %v1133_v36  ;;  %v1111_v24 = vsel %vm1042_vm1, %v3282_v12, 0.0  ;;  %v1024_v43 = vmax.f32 %v3185_v42, 0.0 }
 0x229   : > { %v1102_v6 = vrot.slane %v1101_v13, 2  ;;  %v1110_v18 = vadd.f32 %v1109_v45, %v1108_v38  ;;  %v2101_v16 = vpop.f32.mrf.mxu1  ;;  %2115 = vmatmul.mubr.msk.bf16.gmra.mxu0 %vm1205_vm3, %v1174_v8  ;;  %v1175_v33 = vpack.c.bf16 %v1150_v37, %v1149_v63  ;;  %v1025_v11 = vmax.f32 %v3193_v46, 0.0 }
 0x22a   : > { %v3301_v44 = vadd.f32 %v2100_v3, %v3119_v51  ;;  %v1113_v38 = vsel %vm1042_vm1, %v3291_v2, 0.0  ;;  %v1151_v37 = vsel %vm1136_vm2, %v1024_v43, %v1133_v36  ;;  %v3310_v46 = vadd.f32 %v2101_v16, %v3119_v51 }
 0x22b   : > { %v1103_v41 = vadd.f32 %v1102_v6, %v1101_v13  ;;  %v1112_v14 = vadd.f32 %v1111_v24, %v1110_v18  ;;  %v998_v30 = vpop.f32.mrf.mxu1  ;;  %2118 = vmatprep.mubr.msk.bf16.mxu0 %vm1205_vm3, %v1175_v33  ;;  %v1152_v42 = vsel %vm1136_vm2, %v1025_v11, %v1133_v36  ;;  %v1026_v63 = vmax.f32 %v3200_v27, 0.0 }
 0x22c   : > { %v999_v31 = vadd.f32 %v3119_v51, %v998_v30  ;;  %v1117_v45 = vsel %vm1042_vm1, %v3301_v44, 0.0  ;;  %v1176_v8 = vpack.c.bf16 %v1152_v42, %v1151_v37  ;;  %v1119_v24 = vsel %vm1042_vm1, %v3310_v46, 0.0 }
 0x22d   : > { %v1104_v39 = vrot.slane %v1103_v41, 1  ;;  %v1114_v20 = vadd.f32 %v1113_v38, %v1112_v14  ;;  %v1027_v51 = vmax.f32 %v3214_v9, 0.0  ;;  %v1031_v36 = vmax.f32 %v3247_v19, 0.0 }
 0x22e   : > { %v1115_v13 = vsel %vm1042_vm1, %v999_v31, 0.0  ;;  %v1028_v43 = vmax.f32 %v3211_v29, 0.0  ;;  %v1029_v11 = vmax.f32 %v3222_v4, 0.0  ;;  %v1032_v42 = vmax.f32 %v3241_v10, 0.0 }
 0x22f   : > { %v1105_v3 = vadd.f32 %v1104_v39, %v1103_v41  ;;  %v1116_v56 = vadd.f32 %v1115_v13, %v1114_v20  ;;  %v1030_v41 = vmax.f32 %v3231_v48, 0.0  ;;  %v1033_v13 = vmax.f32 %v3252_v23, 0.0 }
 0x230   : > { %v1035_v10 = vmax.f32 %v3274_v17, 0.0 }
 0x231   : > { %v1130_v6 = vmul.f32 0.015625, %v1105_v3  ;;  %v1118_v18 = vadd.f32 %v1117_v45, %v1116_v56  ;;  %2119 = vmatmul.mubr.msk.bf16.gmra.mxu0 %vm1205_vm3, %v1176_v8 }
 0x233   : > { %v1134_v16 = vmax.f32 %v1130_v6, 0.0  ;;  %v1120_v33 = vadd.f32 %v1119_v24, %v1118_v18  ;;  %v1036_v24 = vmax.f32 %v3271_v21, 0.0 }
 0x235   : > { %v1158_v14 = vsel %vm1136_vm2, %v1031_v36, %v1134_v16  ;;  %v1121_v27 = vrot.slane %v1120_v33, 4  ;;  %v1153_v30 = vsel %vm1136_vm2, %v1026_v63, %v1134_v16  ;;  %v1154_v38 = vsel %vm1136_vm2, %v1027_v51, %v1134_v16 }
 0x236   : > { %v1177_v39 = vpack.c.bf16 %v1154_v38, %v1153_v30  ;;  %v1155_v9 = vsel %vm1136_vm2, %v1028_v43, %v1134_v16  ;;  %v1156_v19 = vsel %vm1136_vm2, %v1029_v11, %v1134_v16  ;;  %v1157_v20 = vsel %vm1136_vm2, %v1030_v41, %v1134_v16 }
 0x237   : > { %v1122_v37 = vadd.f32 %v1121_v27, %v1120_v33  ;;  %v1178_v29 = vpack.c.bf16 %v1156_v19, %v1155_v9  ;;  %v1179_v48 = vpack.c.bf16 %v1158_v14, %v1157_v20  ;;  %v1159_v45 = vsel %vm1136_vm2, %v1032_v42, %v1134_v16  ;;  %v3357_v9 = vld [vmem:[#allocation5 + $0x2] ss:$0 sm:$0xff] }
 0x238   : > { %2122 = vmatprep.mubr.msk.bf16.mxu0 %vm1205_vm3, %v1177_v39  ;;  %v1160_v8 = vsel %vm1136_vm2, %v1033_v13, %v1134_v16  ;;  %v1034_v51 = vmax.f32 %v3259_v15, 0.0  ;;  %v1037_v36 = vmax.f32 %v3282_v12, 0.0  ;;  %v1038_v33 = vmax.f32 %v3291_v2, 0.0 }
 0x239   : > { %v1123_v4 = vrot.slane %v1122_v37, 2  ;;  %2123 = vmatmul.mubr.msk.bf16.gmra.mxu0 %vm1205_vm3, %v1178_v29  ;;  %v1180_v18 = vpack.c.bf16 %v1160_v8, %v1159_v45  ;;  %v1039_v43 = vmax.f32 %v999_v31, 0.0  ;;  %v1040_v2 = vmax.f32 %v3301_v44, 0.0 }
 0x23a   : > { %2126 = vmatprep.mubr.msk.bf16.mxu0 %vm1205_vm3, %v1179_v48  ;;  %v1041_v31 = vmax.f32 %v3310_v46, 0.0 }
 0x23b   : > { %v1124_v3 = vadd.f32 %v1123_v4, %v1122_v37 }
 0x23d   : > { %v1125_v56 = vrot.slane %v1124_v3, 1 }
 0x23f   : > { %v1126_v6 = vadd.f32 %v1125_v56, %v1124_v3 }
 0x241   : > { %v1131_v63 = vmul.f32 0.015625, %v1126_v6  ;;  %2127 = vmatmul.mubr.msk.bf16.gmra.mxu0 %vm1205_vm3, %v1180_v18 }
 0x243   : > { %v1135_v23 = vmax.f32 %v1131_v63, 0.0 }
 0x245   : > { %v1161_v11 = vsel %vm1136_vm2, %v1034_v51, %v1135_v23  ;;  %v1162_v16 = vsel %vm1136_vm2, %v1035_v10, %v1135_v23  ;;  %v1163_v41 = vsel %vm1136_vm2, %v1036_v24, %v1135_v23  ;;  %v1166_v14 = vsel %vm1136_vm2, %v1039_v43, %v1135_v23 }
 0x246   : > { %v1181_v27 = vpack.c.bf16 %v1162_v16, %v1161_v11  ;;  %v1164_v21 = vsel %vm1136_vm2, %v1037_v36, %v1135_v23  ;;  %v1165_v15 = vsel %vm1136_vm2, %v1038_v33, %v1135_v23  ;;  %v1167_v30 = vsel %vm1136_vm2, %v1040_v2, %v1135_v23 }
 0x247   : > { %v1182_v17 = vpack.c.bf16 %v1164_v21, %v1163_v41  ;;  %v1183_v12 = vpack.c.bf16 %v1166_v14, %v1165_v15  ;;  %v1168_v38 = vsel %vm1136_vm2, %v1041_v31, %v1135_v23 }
 0x248   : > { %2130 = vmatprep.mubr.msk.bf16.mxu0 %vm1205_vm3, %v1181_v27  ;;  %v1184_v39 = vpack.c.bf16 %v1168_v38, %v1167_v30 }
 0x249   : > { %2131 = vmatmul.mubr.msk.bf16.gmra.mxu0 %vm1205_vm3, %v1182_v17 }
 0x24a   : > { %2134 = vmatprep.mubr.msk.bf16.mxu0 %vm1205_vm3, %v1183_v12 }
 0x251   : > { %2135 = vmatmul.mubr.msk.bf16.gmra.mxu0 %vm1205_vm3, %v1184_v39 }
 0x2d9   : > { %v2108_v19 = vpop.f32.mrf.mxu0 }
 0x2da   : > { %v1297_v20 = vadd.f32 %v2108_v19, %v3357_v9 }
 0x2db   : > { %v1288_v37 = vpop.f32.mrf.mxu0 }
 0x2dc   : > { %v1924_v29 = vmul.f32 -1.442695, %v1297_v20  ;;  %v1289_v44 = vadd.f32 %v3357_v9, %v1288_v37 }
 0x2dd   : > { %v2109_v4 = vpop.f32.mrf.mxu0 }
 0x2de   : > { %2249 = vpow2.f32 %v1924_v29  ;;  %v1922_v46 = vmul.f32 -1.442695, %v1289_v44  ;;  %v1300_v48 = vadd.f32 %v2109_v4, %v3357_v9 }
 0x2df   : > { %v1291_v42 = vpop.f32.mrf.mxu0 }
 0x2e0   : > { %2251 = vpow2.f32 %v1922_v46  ;;  %v1925_v13 = vmul.f32 -1.442695, %v1300_v48  ;;  %v1292_v3 = vadd.f32 %v3357_v9, %v1291_v42 }
 0x2e1   : > { %v2112_v56 = vpop.f32.mrf.mxu0 }
 0x2e2   : > { %2253 = vpow2.f32 %v1925_v13  ;;  %v1923_v45 = vmul.f32 -1.442695, %v1292_v3  ;;  %v1313_v8 = vadd.f32 %v2112_v56, %v3357_v9 }
 0x2e3   : > { %v1304_v6 = vpop.f32.mrf.mxu0 }
 0x2e4   : > { %2255 = vpow2.f32 %v1923_v45  ;;  %v1928_v18 = vmul.f32 -1.442695, %v1313_v8  ;;  %v1305_v63 = vadd.f32 %v3357_v9, %v1304_v6 }
 0x2e5   : > { %v2113_v24 = vpop.f32.mrf.mxu0 }
 0x2e6   : > { %2257 = vpow2.f32 %v1928_v18  ;;  %v1926_v51 = vmul.f32 -1.442695, %v1305_v63  ;;  %v1316_v10 = vadd.f32 %v2113_v24, %v3357_v9 }
 0x2e7   : > { %v1307_v23 = vpop.f32.mrf.mxu0 }
 0x2e8   : > { %2259 = vpow2.f32 %v1926_v51  ;;  %v1929_v36 = vmul.f32 -1.442695, %v1316_v10  ;;  %v1308_v33 = vadd.f32 %v3357_v9, %v1307_v23 }
 0x2e9   : > { %v2116_v43 = vpop.f32.mrf.mxu0 }
 0x2ea   : > { %2261 = vpow2.f32 %v1929_v36  ;;  %v1927_v11 = vmul.f32 -1.442695, %v1308_v33  ;;  %v1329_v16 = vadd.f32 %v2116_v43, %v3357_v9 }
 0x2eb   : > { %v2250_v41 = vpop.eup %2249  ;;  %v1320_v14 = vpop.f32.mrf.mxu0 }
 0x2ec   : > { %v1513_v27 = vadd.f32 1.0, %v2250_v41  ;;  %2263 = vpow2.f32 %v1927_v11  ;;  %v1932_v21 = vmul.f32 -1.442695, %v1329_v16  ;;  %v1321_v15 = vadd.f32 %v3357_v9, %v1320_v14 }
 0x2ed   : > { %v2252_v17 = vpop.eup %2251  ;;  %v2117_v12 = vpop.f32.mrf.mxu0  ;;  %v1609_v11 = vsub.f32 %v2780_v28, %v2831_v0 }
 0x2ee   : > { %2265 = vrcp.f32 %v1513_v27  ;;  %v1511_v2 = vadd.f32 1.0, %v2252_v17  ;;  %v1930_v31 = vmul.f32 -1.442695, %v1321_v15  ;;  %v1332_v30 = vadd.f32 %v2117_v12, %v3357_v9 }
 0x2ef   : > { %v2254_v38 = vpop.eup %2253  ;;  %2267 = vpow2.f32 %v1932_v21  ;;  %v1323_v39 = vpop.f32.mrf.mxu0  ;;  %v1607_v15 = vsub.f32 %v2776_v26, %v2820_v60 }
 0x2f0   : > { %2269 = vrcp.f32 %v1511_v2  ;;  %v1514_v19 = vadd.f32 1.0, %v2254_v38  ;;  %v1933_v20 = vmul.f32 -1.442695, %v1332_v30  ;;  %v1324_v37 = vadd.f32 %v3357_v9, %v1323_v39 }
 0x2f1   : > { %v2256_v29 = vpop.eup %2255  ;;  %2271 = vpow2.f32 %v1930_v31  ;;  %v2120_v44 = vpop.f32.mrf.mxu0  ;;  %v1610_v38 = vsub.f32 %v2784_v32, %v2814_v57 }
 0x2f2   : > { %2273 = vrcp.f32 %v1514_v19  ;;  %v1512_v4 = vadd.f32 1.0, %v2256_v29  ;;  %v1931_v46 = vmul.f32 -1.442695, %v1324_v37  ;;  %v1345_v48 = vadd.f32 %v2120_v44, %v3357_v9 }
 0x2f3   : > { %v2258_v42 = vpop.eup %2257  ;;  %2275 = vpow2.f32 %v1933_v20  ;;  %v1336_v13 = vpop.f32.mrf.mxu0 }
 0x2f4   : > { %2277 = vrcp.f32 %v1512_v4  ;;  %v1517_v3 = vadd.f32 1.0, %v2258_v42  ;;  %v1936_v56 = vmul.f32 -1.442695, %v1345_v48  ;;  %v1337_v45 = vadd.f32 %v3357_v9, %v1336_v13 }
 0x2f5   : > { %v2260_v8 = vpop.eup %2259  ;;  %2279 = vpow2.f32 %v1931_v46  ;;  %v2121_v6 = vpop.f32.mrf.mxu0  ;;  %v1608_v4 = vsub.f32 %v2789_v35, %v2823_v61 }
 0x2f6   : > { %2281 = vrcp.f32 %v1517_v3  ;;  %v1515_v18 = vadd.f32 1.0, %v2260_v8  ;;  %v1934_v63 = vmul.f32 -1.442695, %v1337_v45  ;;  %v1348_v24 = vadd.f32 %v2121_v6, %v3357_v9 }
 0x2f7   : > { %v2262_v51 = vpop.eup %2261  ;;  %2283 = vpow2.f32 %v1936_v56  ;;  %v1339_v10 = vpop.f32.mrf.mxu0  ;;  %v1613_v56 = vsub.f32 %v2807_v53, %v2885_v1 }
 0x2f8   : > { %2285 = vrcp.f32 %v1515_v18  ;;  %v1518_v23 = vadd.f32 1.0, %v2262_v51  ;;  %v1937_v36 = vmul.f32 -1.442695, %v1348_v24  ;;  %v1340_v33 = vadd.f32 %v3357_v9, %v1339_v10 }
 0x2f9   : > { %v2264_v43 = vpop.eup %2263  ;;  %2287 = vpow2.f32 %v1934_v63  ;;  %v2124_v16 = vpop.f32.mrf.mxu0 }
 0x2fa   : > { %2289 = vrcp.f32 %v1518_v23  ;;  %v1516_v41 = vadd.f32 1.0, %v2264_v43  ;;  %v1935_v14 = vmul.f32 -1.442695, %v1340_v33  ;;  %v1361_v27 = vadd.f32 %v2124_v16, %v3357_v9 }
 0x2fb   : > { %v2266_v21 = vpop.eup %2265  ;;  %2291 = vpow2.f32 %v1937_v36  ;;  %v1352_v17 = vpop.f32.mrf.mxu0  ;;  %v1611_v23 = vsub.f32 %v2804_v50, %v2876_v52 }
 0x2fc   : > { %v2268_v12 = vpop.eup %2267  ;;  %v1641_v2 = vmul.f32 %v2266_v21, %v1609_v11  ;;  %2293 = vrcp.f32 %v1516_v41  ;;  %v1940_v31 = vmul.f32 -1.442695, %v1361_v27  ;;  %v1353_v28 = vadd.f32 %v3357_v9, %v1352_v17 }
 0x2fd   : > { %v2270_v30 = vpop.eup %2269  ;;  %v1521_v39 = vadd.f32 1.0, %v2268_v12  ;;  %2295 = vpow2.f32 %v1935_v14  ;;  %v2125_v19 = vpop.f32.mrf.mxu0  ;;  %v1614_v41 = vsub.f32 %v2817_v58, %v2867_v47 }
 0x2fe   : > { %v2272_v20 = vpop.eup %2271  ;;  %v1673_v37 = vadd.f32 %v1641_v2, %v2831_v0  ;;  %v1639_v26 = vmul.f32 %v2270_v30, %v1607_v15  ;;  %2297 = vpow2.f32 %v1940_v31  ;;  %v1938_v29 = vmul.f32 -1.442695, %v1353_v28 }
 0x2ff   : > { %v2274_v44 = vpop.eup %2273  ;;  %2299 = vrcp.f32 %v1521_v39  ;;  %v1519_v46 = vadd.f32 1.0, %v2272_v20  ;;  %v1364_v48 = vadd.f32 %v2125_v19, %v3357_v9  ;;  %v1355_v42 = vpop.f32.mrf.mxu0  ;;  %v1612_v2 = vsub.f32 %v2826_v62, %v2870_v49 }
 0x300   : > { %v2276_v32 = vpop.eup %2275  ;;  %1705 = vst.msk [vmem:[%s3390_s11 + $0x10] sm:$0xff] %vm443_vm0, %v1673_v37  ;;  %v1671_v0 = vadd.f32 %v1639_v26, %v2820_v60  ;;  %v1642_v13 = vmul.f32 %v2274_v44, %v1610_v38  ;;  %2301 = vpow2.f32 %v1938_v29  ;;  %v1356_v3 = vadd.f32 %v3357_v9, %v1355_v42 }
 0x301   : > { %v2278_v35 = vpop.eup %2277  ;;  %2303 = vrcp.f32 %v1519_v46  ;;  %v1522_v45 = vadd.f32 1.0, %v2276_v32  ;;  %v1941_v8 = vmul.f32 -1.442695, %v1364_v48  ;;  %v2128_v6 = vpop.f32.mrf.mxu0  ;;  %v1617_v46 = vsub.f32 %v2846_v25, %v2945_v40 }
 0x302   : > { %v2280_v18 = vpop.eup %2279  ;;  %1703 = vst.msk [vmem:[%s3390_s11] sm:$0xff] %vm443_vm0, %v1671_v0  ;;  %v1674_v63 = vadd.f32 %v1642_v13, %v2814_v57  ;;  %v1640_v24 = vmul.f32 %v2278_v35, %v1608_v4  ;;  %v1939_v60 = vmul.f32 -1.442695, %v1356_v3  ;;  %v1377_v51 = vadd.f32 %v2128_v6, %v3357_v9 }
 0x303   : > { %v2282_v10 = vpop.eup %2281  ;;  %2305 = vrcp.f32 %v1522_v45  ;;  %v1520_v53 = vadd.f32 1.0, %v2280_v18  ;;  %v1368_v36 = vpop.f32.mrf.mxu0  ;;  %v1615_v13 = vsub.f32 %v2852_v34, %v2937_v22  ;;  %v3725_v18 = vld [vmem:[#allocation11_spill] sm:$0xff] }
 0x304   : > { %v2284_v33 = vpop.eup %2283  ;;  %1706 = vst.msk [vmem:[%s3390_s11 + $0x18] sm:$0xff] %vm443_vm0, %v1674_v63  ;;  %v1672_v43 = vadd.f32 %v1640_v24, %v2823_v61  ;;  %v1645_v11 = vmul.f32 %v2282_v10, %v1613_v56  ;;  %2307 = vpow2.f32 %v1941_v8  ;;  %v1944_v57 = vmul.f32 -1.442695, %v1377_v51 }
 0x305   : > { %v2286_v16 = vpop.eup %2285  ;;  %2309 = vrcp.f32 %v1520_v53  ;;  %v1525_v14 = vadd.f32 1.0, %v2284_v33  ;;  %v1369_v50 = vadd.f32 %v3357_v9, %v1368_v36  ;;  %v2129_v27 = vpop.f32.mrf.mxu0  ;;  %v1618_v63 = vsub.f32 %v3725_v18, %v2930_v59 }
 0x306   : > { %v2288_v21 = vpop.eup %2287  ;;  %1704 = vst.msk [vmem:[%s3390_s11 + $0x8] sm:$0xff] %vm443_vm0, %v1672_v43  ;;  %v1677_v15 = vadd.f32 %v1645_v11, %v2885_v1  ;;  %v1643_v17 = vmul.f32 %v2286_v16, %v1611_v23  ;;  %2311 = vpow2.f32 %v1939_v60  ;;  %v1380_v61 = vadd.f32 %v2129_v27, %v3357_v9  ;;  %v3726_v43 = vld [vmem:[#allocation21_spill] sm:$0xff]  ;;  %v3727_v11 = vld [vmem:[#allocation14_spill] sm:$0xff] }
 0x307   : > { %v2290_v12 = vpop.eup %2289  ;;  %2313 = vrcp.f32 %v1525_v14  ;;  %v1523_v58 = vadd.f32 1.0, %v2288_v21  ;;  %v1942_v31 = vmul.f32 -1.442695, %v1369_v50  ;;  %v1371_v28 = vpop.f32.mrf.mxu0 }
 0x308   : > { %v2292_v30 = vpop.eup %2291  ;;  %1709 = vst.msk [vmem:[%s3390_s11 + $0x30] sm:$0xff] %vm443_vm0, %v1677_v15  ;;  %v1675_v38 = vadd.f32 %v1643_v17, %v2876_v52  ;;  %v1646_v39 = vmul.f32 %v2290_v12, %v1614_v41  ;;  %2315 = vpow2.f32 %v1944_v57  ;;  %v1945_v1 = vmul.f32 -1.442695, %v1380_v61 }
 0x309   : > { %v2294_v19 = vpop.eup %2293  ;;  %2317 = vrcp.f32 %v1523_v58  ;;  %v1526_v20 = vadd.f32 1.0, %v2292_v30  ;;  %v1372_v37 = vadd.f32 %v3357_v9, %v1371_v28  ;;  %v2132_v62 = vpop.f32.mrf.mxu0  ;;  %v1616_v57 = vsub.f32 %v3727_v11, %v3726_v43 }
 0x30a   : > { %v2296_v26 = vpop.eup %2295  ;;  %1707 = vst.msk [vmem:[%s3390_s11 + $0x20] sm:$0xff] %vm443_vm0, %v1675_v38  ;;  %v1678_v29 = vadd.f32 %v1646_v39, %v2867_v47  ;;  %v1644_v44 = vmul.f32 %v2294_v19, %v1612_v2  ;;  %2319 = vpow2.f32 %v1942_v31  ;;  %v1393_v4 = vadd.f32 %v2132_v62, %v3357_v9 }
 0x30b   : > { %v2298_v52 = vpop.eup %2297  ;;  %2321 = vrcp.f32 %v1526_v20  ;;  %v1524_v48 = vadd.f32 1.0, %v2296_v26  ;;  %v1943_v42 = vmul.f32 -1.442695, %v1372_v37  ;;  %v1384_v32 = vpop.f32.mrf.mxu0  ;;  %v1621_v17 = vsub.f32 %v2890_v5, %v2995_v55  ;;  %v3728_v26 = vld [vmem:[#allocation24_spill] sm:$0xff] }
 0x30c   : > { %v2300_v0 = vpop.eup %2299  ;;  %1710 = vst.msk [vmem:[%s3390_s11 + $0x38] sm:$0xff] %vm443_vm0, %v1678_v29  ;;  %v1676_v47 = vadd.f32 %v1644_v44, %v2870_v49  ;;  %v1529_v3 = vadd.f32 1.0, %v2298_v52  ;;  %2323 = vpow2.f32 %v1945_v1  ;;  %v1948_v45 = vmul.f32 -1.442695, %v1393_v4  ;;  %v3729_v29 = vld [vmem:[#allocation15_spill] sm:$0xff] }
 0x30d   : > { %v2302_v35 = vpop.eup %2301  ;;  %v1649_v56 = vmul.f32 %v2300_v0, %v1617_v46  ;;  %2325 = vrcp.f32 %v1524_v48  ;;  %v1385_v25 = vadd.f32 %v3357_v9, %v1384_v32  ;;  %v2133_v8 = vpop.f32.mrf.mxu0  ;;  %v1619_v38 = vsub.f32 %v2896_v7, %v2973_v54 }
 0x30e   : > { %v2304_v6 = vpop.eup %2303  ;;  %1708 = vst.msk [vmem:[%s3390_s11 + $0x28] sm:$0xff] %vm443_vm0, %v1676_v47  ;;  %2327 = vrcp.f32 %v1529_v3  ;;  %v1527_v34 = vadd.f32 1.0, %v2302_v35  ;;  %v1396_v49 = vadd.f32 %v2133_v8, %v3357_v9  ;;  %v1622_v44 = vsub.f32 %v3729_v29, %v3728_v26  ;;  %v3731_v47 = vld [vmem:[#allocation16_spill] sm:$0xff] }
 0x30f   : > { %v1681_v24 = vadd.f32 %v1649_v56, %v2945_v40  ;;  %v1647_v60 = vmul.f32 %v2304_v6, %v1615_v13  ;;  %2329 = vpow2.f32 %v1943_v42  ;;  %v1946_v51 = vmul.f32 -1.442695, %v1385_v25  ;;  %v1387_v10 = vpop.f32.mrf.mxu0  ;;  %v3730_v13 = vld [vmem:[#allocation25_spill] sm:$0xff] }
 0x310   : > { %v2306_v23 = vpop.eup %2305  ;;  %2331 = vrcp.f32 %v1527_v34  ;;  %v1949_v53 = vmul.f32 -1.442695, %v1396_v49  ;;  %v1388_v36 = vadd.f32 %v3357_v9, %v1387_v10  ;;  %v1620_v3 = vsub.f32 %v3731_v47, %v3730_v13  ;;  %v3733_v25 = vld [vmem:[#allocation17_spill] sm:$0xff] }
 0x311   : > { %v2308_v33 = vpop.eup %2307  ;;  %1713 = vst.msk [vmem:[%s3390_s11 + $0x50] sm:$0xff] %vm443_vm0, %v1681_v24  ;;  %v1679_v16 = vadd.f32 %v1647_v60, %v2937_v22  ;;  %v1650_v41 = vmul.f32 %v2306_v23, %v1618_v63  ;;  %2333 = vpow2.f32 %v1948_v45  ;;  %v2136_v40 = vpop.f32.mrf.mxu0  ;;  %v3732_v45 = vld [vmem:[#allocation32_spill] sm:$0xff] }
 0x312   : > { %v2310_v14 = vpop.eup %2309  ;;  %v1530_v50 = vadd.f32 1.0, %v2308_v33  ;;  %2335 = vpow2.f32 %v1946_v51  ;;  %v1947_v27 = vmul.f32 -1.442695, %v1388_v36  ;;  %v1409_v21 = vadd.f32 %v2136_v40, %v3357_v9  ;;  %v3735_v24 = vld [vmem:[#allocation12_spill] sm:$0xff]  ;;  %v3737_v40 = vld [vmem:[#allocation18_spill] sm:$0xff] }
 0x313   : > { %v2312_v15 = vpop.eup %2311  ;;  %1711 = vst.msk [vmem:[%s3390_s11 + $0x40] sm:$0xff] %vm443_vm0, %v1679_v16  ;;  %v1682_v61 = vadd.f32 %v1650_v41, %v2930_v59  ;;  %v1648_v12 = vmul.f32 %v2310_v14, %v1616_v57  ;;  %2337 = vpow2.f32 %v1949_v53  ;;  %v1400_v22 = vpop.f32.mrf.mxu0  ;;  %v1625_v8 = vsub.f32 %v3733_v25, %v3732_v45  ;;  %v3736_v41 = vld [vmem:[#allocation33_spill] sm:$0xff] }
 0x314   : > { %v2314_v2 = vpop.eup %2313  ;;  %2339 = vrcp.f32 %v1530_v50  ;;  %v1528_v58 = vadd.f32 1.0, %v2312_v15  ;;  %v1952_v31 = vmul.f32 -1.442695, %v1409_v21  ;;  %v1401_v28 = vadd.f32 %v3357_v9, %v1400_v22 }
 0x315   : > { %v2316_v30 = vpop.eup %2315  ;;  %1714 = vst.msk [vmem:[%s3390_s11 + $0x58] sm:$0xff] %vm443_vm0, %v1682_v61  ;;  %v1680_v5 = vadd.f32 %v1648_v12, %v3726_v43  ;;  %v1653_v39 = vmul.f32 %v2314_v2, %v1621_v17  ;;  %2341 = vpow2.f32 %v1947_v27  ;;  %v2137_v59 = vpop.f32.mrf.mxu0  ;;  %v1626_v14 = vsub.f32 %v3737_v40, %v3736_v41  ;;  %v3738_v61 = vld [vmem:[#allocation23_spill] sm:$0xff]  ;;  %v3739_v12 = vld [vmem:[#allocation13_spill] sm:$0xff] }
 0x316   : > { %v2318_v1 = vpop.eup %2317  ;;  %2343 = vrcp.f32 %v1528_v58  ;;  %v1533_v19 = vadd.f32 1.0, %v2316_v30  ;;  %v1950_v20 = vmul.f32 -1.442695, %v1401_v28  ;;  %v1412_v37 = vadd.f32 %v2137_v59, %v3357_v9  ;;  %v3740_v30 = vld [vmem:[#allocation40_spill] sm:$0xff] }
 0x317   : > { %v2320_v62 = vpop.eup %2319  ;;  %1712 = vst.msk [vmem:[%s3390_s11 + $0x48] sm:$0xff] %vm443_vm0, %v1680_v5  ;;  %v1685_v7 = vadd.f32 %v1653_v39, %v2995_v55  ;;  %v1651_v4 = vmul.f32 %v2318_v1, %v1619_v38  ;;  %2345 = vpow2.f32 %v1952_v31  ;;  %v1403_v52 = vpop.f32.mrf.mxu0  ;;  %v1624_v22 = vsub.f32 %v3739_v12, %v3738_v61  ;;  %v3741_v38 = vld [vmem:[#allocation26_spill] sm:$0xff] }
 0x318   : > { %v2322_v46 = vpop.eup %2321  ;;  %2347 = vrcp.f32 %v1533_v19  ;;  %v1531_v48 = vadd.f32 1.0, %v2320_v62  ;;  %v1953_v42 = vmul.f32 -1.442695, %v1412_v37  ;;  %v1404_v32 = vadd.f32 %v3357_v9, %v1403_v52  ;;  %v3742_v37 = vld [vmem:[#allocation30_spill] sm:$0xff]  ;;  %v3743_v62 = vld [vmem:[#allocation19_spill] sm:$0xff] }
 0x319   : > { %v2324_v0 = vpop.eup %2323  ;;  %1717 = vst.msk [vmem:[%s3390_s11 + $0x70] sm:$0xff] %vm443_vm0, %v1685_v7  ;;  %v1683_v35 = vadd.f32 %v1651_v4, %v2973_v54  ;;  %v1654_v56 = vmul.f32 %v2322_v46, %v1622_v44  ;;  %2349 = vpow2.f32 %v1950_v20  ;;  %v3734_v54 = vld [vmem:[#allocation22_spill] sm:$0xff]  ;;  %v1629_v5 = vsub.f32 %v3741_v38, %v3740_v30  ;;  %v3744_v46 = vld [vmem:[#allocation41_spill] sm:$0xff] }
 0x31a   : > { %v2326_v55 = vpop.eup %2325  ;;  %2351 = vrcp.f32 %v1531_v48  ;;  %v1534_v6 = vadd.f32 1.0, %v2324_v0  ;;  %v1951_v18 = vmul.f32 -1.442695, %v1404_v32  ;;  %v1623_v60 = vsub.f32 %v3735_v24, %v3734_v54  ;;  %v3745_v48 = vld [vmem:[#allocation27_spill] sm:$0xff]  ;;  %v3750_v24 = vld [vmem:[#allocation38_spill] sm:$0xff] }
 0x31b   : > { %v2328_v63 = vpop.eup %2327  ;;  %1715 = vst.msk [vmem:[%s3390_s11 + $0x60] sm:$0xff] %vm443_vm0, %v1683_v35  ;;  %v1686_v9 = vadd.f32 %v1654_v56, %v3728_v26  ;;  %v1652_v34 = vmul.f32 %v2326_v55, %v1620_v3  ;;  %2353 = vpow2.f32 %v1953_v42  ;;  %v1627_v26 = vsub.f32 %v3743_v62, %v3742_v37  ;;  %v3746_v55 = vld [vmem:[#allocation31_spill] sm:$0xff]  ;;  %v3762_v62 = vld [vmem:[#allocation45_spill] sm:$0xff] }
 0x31c   : > { %v2330_v49 = vpop.eup %2329  ;;  %v1657_v51 = vmul.f32 %v2328_v63, %v1625_v8  ;;  %2355 = vrcp.f32 %v1534_v6  ;;  %v1630_v42 = vsub.f32 %v3745_v48, %v3744_v46  ;;  %v3748_v63 = vld [vmem:[#allocation46_spill] sm:$0xff] }
 0x31d   : > { %v2332_v10 = vpop.eup %2331  ;;  %1718 = vst.msk [vmem:[%s3390_s11 + $0x78] sm:$0xff] %vm443_vm0, %v1686_v9  ;;  %v1684_v23 = vadd.f32 %v1652_v34, %v3730_v13  ;;  %v1532_v53 = vadd.f32 1.0, %v2330_v49  ;;  %2357 = vpow2.f32 %v1951_v18  ;;  %v3749_v9 = vld [vmem:[#allocation34_spill] sm:$0xff] }
 0x31e   : > { %v2334_v36 = vpop.eup %2333  ;;  %v1689_v33 = vadd.f32 %v1657_v51, %v3732_v45  ;;  %v1655_v43 = vmul.f32 %v2332_v10, %v1623_v60  ;;  %v3747_v45 = vld [vmem:[#allocation20_spill] sm:$0xff]  ;;  %v1633_v34 = vsub.f32 %v3749_v9, %v3748_v63 }
 0x31f   : > { %v2336_v11 = vpop.eup %2335  ;;  %1716 = vst.msk [vmem:[%s3390_s11 + $0x68] sm:$0xff] %vm443_vm0, %v1684_v23  ;;  %2359 = vrcp.f32 %v1532_v53  ;;  %v1537_v57 = vadd.f32 1.0, %v2334_v36  ;;  %v1628_v25 = vsub.f32 %v3747_v45, %v3746_v55  ;;  %v3751_v60 = vld [vmem:[#allocation28_spill] sm:$0xff]  ;;  %v3752_v23 = vld [vmem:[#allocation47_spill] sm:$0xff] }
 0x320   : > { %v2338_v16 = vpop.eup %2337  ;;  %1721 = vst.msk [vmem:[%s3390_s11 + $0x90] sm:$0xff] %vm443_vm0, %v1689_v33  ;;  %v1687_v50 = vadd.f32 %v1655_v43, %v3734_v54  ;;  %v1535_v27 = vadd.f32 1.0, %v2336_v11  ;;  %v1631_v51 = vsub.f32 %v3751_v60, %v3750_v24  ;;  %v3753_v53 = vld [vmem:[#allocation35_spill] sm:$0xff] }
 0x321   : > { %v2340_v21 = vpop.eup %2339  ;;  %2361 = vrcp.f32 %v1537_v57  ;;  %v1538_v15 = vadd.f32 1.0, %v2338_v16  ;;  %v1634_v36 = vsub.f32 %v3753_v53, %v3752_v23  ;;  %v3754_v16 = vld [vmem:[#allocation39_spill] sm:$0xff] }
 0x322   : > { %v2342_v17 = vpop.eup %2341  ;;  %1719 = vst.msk [vmem:[%s3390_s11 + $0x80] sm:$0xff] %vm443_vm0, %v1687_v50  ;;  %v1658_v2 = vmul.f32 %v2340_v21, %v1626_v14  ;;  %2363 = vrcp.f32 %v1535_v27 }
 0x323   : > { %v2344_v58 = vpop.eup %2343  ;;  %2365 = vrcp.f32 %v1538_v15  ;;  %v1536_v31 = vadd.f32 1.0, %v2342_v17  ;;  %v3756_v15 = vld [vmem:[#allocation48_spill] sm:$0xff]  ;;  %v3757_v17 = vld [vmem:[#allocation42_spill] sm:$0xff] }
 0x324   : > { %v2346_v28 = vpop.eup %2345  ;;  %v1690_v39 = vadd.f32 %v1658_v2, %v3736_v41  ;;  %v1656_v59 = vmul.f32 %v2344_v58, %v1624_v22  ;;  %v3755_v41 = vld [vmem:[#allocation29_spill] sm:$0xff]  ;;  %v3758_v58 = vld [vmem:[#allocation44_spill] sm:$0xff] }
 0x325   : > { %v2348_v1 = vpop.eup %2347  ;;  %2367 = vrcp.f32 %v1536_v31  ;;  %v1541_v19 = vadd.f32 1.0, %v2346_v28  ;;  %v1632_v40 = vsub.f32 %v3755_v41, %v3754_v16  ;;  %v3759_v31 = vld [vmem:[#allocation36_spill] sm:$0xff] }
 0x326   : > { %v2350_v20 = vpop.eup %2349  ;;  %1722 = vst.msk [vmem:[%s3390_s11 + $0x98] sm:$0xff] %vm443_vm0, %v1690_v39  ;;  %v1688_v29 = vadd.f32 %v1656_v59, %v3738_v61  ;;  %v1661_v44 = vmul.f32 %v2348_v1, %v1629_v5  ;;  %v1637_v61 = vsub.f32 %v3757_v17, %v3756_v15  ;;  %v1635_v28 = vsub.f32 %v3759_v31, %v3758_v58  ;;  %v3760_v39 = vld [vmem:[#allocation49_spill] sm:$0xff]  ;;  %v3761_v59 = vld [vmem:[#allocation43_spill] sm:$0xff] }
 0x327   : > { %v2352_v7 = vpop.eup %2351  ;;  %2369 = vrcp.f32 %v1541_v19  ;;  %v1539_v4 = vadd.f32 1.0, %v2350_v20  ;;  %v1638_v1 = vsub.f32 %v3761_v59, %v3760_v39 }
 0x328   : > { %v2354_v52 = vpop.eup %2353  ;;  %1720 = vst.msk [vmem:[%s3390_s11 + $0x88] sm:$0xff] %vm443_vm0, %v1688_v29  ;;  %v1693_v32 = vadd.f32 %v1661_v44, %v3740_v30  ;;  %v1659_v0 = vmul.f32 %v2352_v7, %v1627_v26  ;;  %v3763_v26 = vld [vmem:[#allocation37_spill] sm:$0xff] }
 0x329   : > { %v2356_v13 = vpop.eup %2355  ;;  %2371 = vrcp.f32 %v1539_v4  ;;  %v1542_v47 = vadd.f32 1.0, %v2354_v52  ;;  %v1636_v29 = vsub.f32 %v3763_v26, %v3762_v62 }
 0x32a   : > { %v2358_v3 = vpop.eup %2357  ;;  %1725 = vst.msk [vmem:[%s3390_s11 + $0xb0] sm:$0xff] %vm443_vm0, %v1693_v32  ;;  %v1691_v35 = vadd.f32 %v1659_v0, %v3742_v37  ;;  %v1662_v56 = vmul.f32 %v2356_v13, %v1630_v42 }
 0x32b   : > { %2373 = vrcp.f32 %v1542_v47  ;;  %v1540_v8 = vadd.f32 1.0, %v2358_v3 }
 0x32c   : > { %v2360_v6 = vpop.eup %2359  ;;  %1723 = vst.msk [vmem:[%s3390_s11 + $0xa0] sm:$0xff] %vm443_vm0, %v1691_v35  ;;  %v1694_v18 = vadd.f32 %v1662_v56, %v3744_v46 }
 0x32d   : > { %v1660_v49 = vmul.f32 %v2360_v6, %v1628_v25  ;;  %2375 = vrcp.f32 %v1540_v8 }
 0x32e   : > { %v2362_v54 = vpop.eup %2361  ;;  %1726 = vst.msk [vmem:[%s3390_s11 + $0xb8] sm:$0xff] %vm443_vm0, %v1694_v18 }
 0x32f   : > { %v2364_v10 = vpop.eup %2363  ;;  %v1692_v33 = vadd.f32 %v1660_v49, %v3746_v55  ;;  %v1665_v43 = vmul.f32 %v2362_v54, %v1633_v34 }
 0x330   : > { %v2366_v11 = vpop.eup %2365  ;;  %v1663_v57 = vmul.f32 %v2364_v10, %v1631_v51 }
 0x331   : > { %1724 = vst.msk [vmem:[%s3390_s11 + $0xa8] sm:$0xff] %vm443_vm0, %v1692_v33  ;;  %v1697_v14 = vadd.f32 %v1665_v43, %v3748_v63  ;;  %v1666_v50 = vmul.f32 %v2366_v11, %v1634_v36 }
 0x332   : > { %v2368_v27 = vpop.eup %2367  ;;  %v1695_v21 = vadd.f32 %v1663_v57, %v3750_v24 }
 0x333   : > { %1729 = vst.msk [vmem:[%s3390_s11 + $0xd0] sm:$0xff] %vm443_vm0, %v1697_v14  ;;  %v1698_v12 = vadd.f32 %v1666_v50, %v3752_v23  ;;  %v1664_v22 = vmul.f32 %v2368_v27, %v1632_v40 }
 0x334   : > { %v2370_v2 = vpop.eup %2369  ;;  %1727 = vst.msk [vmem:[%s3390_s11 + $0xc0] sm:$0xff] %vm443_vm0, %v1695_v21 }
 0x335   : > { %1730 = vst.msk [vmem:[%s3390_s11 + $0xd8] sm:$0xff] %vm443_vm0, %v1698_v12  ;;  %v1696_v30 = vadd.f32 %v1664_v22, %v3754_v16  ;;  %v1669_v38 = vmul.f32 %v2370_v2, %v1637_v61 }
 0x336   : > { %v2372_v5 = vpop.eup %2371 }
 0x337   : > { %1728 = vst.msk [vmem:[%s3390_s11 + $0xc8] sm:$0xff] %vm443_vm0, %v1696_v30  ;;  %v1701_v19 = vadd.f32 %v1669_v38, %v3756_v15  ;;  %v1667_v20 = vmul.f32 %v2372_v5, %v1635_v28 }
 0x338   : > { %v2374_v37 = vpop.eup %2373 }
 0x339   : > { %1733 = vst.msk [vmem:[%s3390_s11 + $0xf0] sm:$0xff] %vm443_vm0, %v1701_v19  ;;  %v1699_v44 = vadd.f32 %v1667_v20, %v3758_v58  ;;  %v1670_v7 = vmul.f32 %v2374_v37, %v1638_v1 }
 0x33a   : > { %v2376_v4 = vpop.eup %2375 }
 0x33b   : > { %1731 = vst.msk [vmem:[%s3390_s11 + $0xe0] sm:$0xff] %vm443_vm0, %v1699_v44  ;;  %v1702_v52 = vadd.f32 %v1670_v7, %v3760_v39  ;;  %v1668_v46 = vmul.f32 %v2376_v4, %v1636_v29 }
 0x33d   : > { %1734 = vst.msk [vmem:[%s3390_s11 + $0xf8] sm:$0xff] %vm443_vm0, %v1702_v52  ;;  %v1700_v48 = vadd.f32 %v1668_v46, %v3762_v62 }
 0x33f   : > { %1732 = vst.msk [vmem:[%s3390_s11 + $0xe8] sm:$0xff] %vm443_vm0, %v1700_v48 }
 0x340   : > { %2444 = shalt.err (!%p2441_p0)
}
 0x341   : > { %s2445_s17 = scalar_lea.hbm %s3556_s9, 4096  ;;  %s2449_s29 = scalar_lea.hbm %s3611_s5, 8192 }
 0x342   : > { %p2446_p4 = scmp.ne.s32.totalorder %s3556_s9, %s2445_s17  ;;  %p2450_p6 = scmp.lt.s32.totalorder %s3556_s9, %s3611_s5 }
 0x343   : > { %p2451_p13 = scmp.lt.s32.totalorder %s2449_s29, %s2445_s17 }
 0x344   : > { %p2447_p11 = pnand %p2446_p4, %p3764_p1 }
 0x345   : > { %p2452_p3 = por %p2451_p13, %p2450_p6 }
 0x346   : > { %p2448_p5 = pneg %p2447_p11 }
 0x348   : > { %p2453_p12 = pnand %p2452_p3, %p2448_p5 }
 0x34a   : > { %2456 = shalt.err (!%p2453_p12)
}
 0x34b   : > { %s2506_s23 = smov 128   ;;  %s2507_s28 = smov 8  }
 0x34c   : > { %2152 = dma.vmem_to_hbm [thread:$0]  (%p3764_p1), %s3558_s26, 4096, %s3556_s9, %s1736_s22, %s2506_s23, %s2506_s23, %s2507_s28  }
 0x34d PF: > { %s1765_s14 = sand.u32 1, %s2487_s18   ;;  %p3765_p7 = scmp.ne.s32.totalorder %s3677_s6, 0 }
 0x34e   : > { %p3766_p8 = scmp.ge.s32.totalorder %s2499_s21, 2  ;;  %s1766_s15 = scalar_lea.sflag [#allocation4], %s1765_s14 }
 0x350   : > { %p2163_p9 = pnand %p3766_p8, %p3765_p7 }
 0x352   : > { %p2164_p10 = pneg %p2163_p9 }
 0x354   : > { %2482 = dma.done.wait (%p2164_p10), %s1766_s15, 4096  }
 0x355   : > { %2484 = vsyncadd (%p2164_p10), %s1766_s15, 4294963200  ;;  %p19_p2 = scmp.ge.s32.totalorder %s2563_s24, 4   ;;  %s3767_s18 = smov %s2491_s19 }
 0x356   : > { %s3768_s19 = smov %s2495_s20  ;;  %s3769_s20 = smov %s2575_s27 }
 0x357   : > { %s3770_s21 = smov %s2563_s24  ;;  %21 = sbr.rel (!%p19_p2) target bundleno = 6 (0x6), region = 89 }
 0x35c   :  { %1771 = vsyncpa [#allocation3], 1 }
 0x35d   :  { %1773 = vsyncpa [#allocation3 + $0x1], 1 }
 0x35e   :  { %1774 = vsyncpa [#allocation6], 1 }
 0x35f   :  { %1775 = vsyncpa [#allocation4], 1 }
 0x360   :  { %1777 = vsyncpa [#allocation4 + $0x1], 1 }

</bundles_post_ra>
